<compile_context>
chip_gen: v5e
topology: v5e:2x2
jax: 0.10.0
libtpu: 0.0.40
codegen_flags: <defaults>
</compile_context>

<pallas_src>
import math

import jax
import jax.numpy as jnp
from jax import lax
from jax.experimental import pallas as pl
from jax.experimental.pallas import tpu as pltpu

# ---------------- config (small, consistent with the forward pass) ----------
VOCAB = 100
VOCAB_PAD = 128   # lane-padded vocab for the in-kernel one-hot gather matmul
MAX_POS = 16
TYPE_VOCAB = 2
H = 32            # hidden size
NUM_HEADS = 2
HEAD_DIM = H // NUM_HEADS
INTER = 64        # FFN intermediate size
NUM_LAYERS = 2
NUM_CLASSES = 2
NCLS_PAD = 128    # lane-dense padded classifier width (sliced back in wrapper)
B = 2             # batch
S = 8             # sequence length
BS = B * S
LN_EPS = 1e-12


# ---------------- in-kernel helpers -----------------------------------------
def _layer_norm(v, g, b):
    mu = jnp.mean(v, axis=-1, keepdims=True)
    var = jnp.mean(jnp.square(v - mu), axis=-1, keepdims=True)
    return (v - mu) * lax.rsqrt(var + LN_EPS) * g + b


def _gelu_exact(v):
    # BERT default activation: exact (erf-based) GELU (kept exact for parity).
    return 0.5 * v * (1.0 + lax.erf(v * (1.0 / math.sqrt(2.0))))


# ---------------- fused Pallas kernel ----------------------------------------
def fused_bert_kernel(ids_ref, mask_ref, wemb_ref, vecs_ref,
                      wqkv_ref, wo_ref, wi_ref, wo2_ref, lsm_ref,
                      poolw_ref, clsw_ref, out_ref):
    # ids_ref:  (BS, 1)  int32 token ids
    # mask_ref: (B, S)   int32 attention mask (1 = valid, 0 = pad)
    # wemb_ref: (VOCAB_PAD, H)   bf16 word embeddings (rows >= VOCAB are zero)
    # vecs_ref: (BS+4, 128) f32: rows 0..BS-1 = pos+type addend (lanes 0:H,
    #           pre-tiled over batch); BS = emb LN gamma; BS+1 = emb LN beta;
    #           BS+2 = pooler bias; BS+3 = classifier bias (lanes 0:NCLS_PAD)
    # wqkv_ref: (L, H, 3H) bf16  [Wq*scale | Wk | Wv]   (heads head-major)
    # wo_ref:   (L, H, H)  bf16 ; wi_ref: (L, H, INTER) bf16 ; wo2_ref: (L, INTER, H) bf16
    # lsm_ref:  (L, 8, 128) f32 rows: 0=bqkv(:3H), 1=bi(:INTER), 2=bo(:H),
    #           3=ln1_g, 4=ln1_b, 5=bo2, 6=ln2_g, 7=ln2_b
    # poolw_ref:(H, H) bf16 ; clsw_ref: (H, NCLS_PAD) bf16
    bf16 = jnp.bfloat16

    # ---- embeddings: one-hot gather on the MXU + pos/type add + LayerNorm ----
    ids = ids_ref[...]                                                  # (BS, 1)
    vocab_iota = lax.broadcasted_iota(jnp.int32, (BS, VOCAB_PAD), 1)
    onehot = jnp.where(ids == vocab_iota, 1.0, 0.0).astype(bf16)        # (BS, 128)
    emb = jnp.dot(onehot, wemb_ref[...], preferred_element_type=jnp.float32)
    emb = emb + vecs_ref[0:BS, 0:H]                                     # + pos + type
    x = _layer_norm(emb, vecs_ref[BS:BS + 1, 0:H], vecs_ref[BS + 1:BS + 2, 0:H])

    # ---- attention-mask bias: computed & broadcast to (B, S, S) ONCE ----
    mask_f = mask_ref[...].astype(jnp.float32)                          # (B, S)
    bias = jnp.broadcast_to(((1.0 - mask_f) * -1e9)[:, None, :], (B, S, S))

    for l in range(NUM_LAYERS):                     # static unroll over layers
        bqkv = lsm_ref[l, 0:1, 0:3 * H]
        bi   = lsm_ref[l, 1:2, 0:INTER]
        bo   = lsm_ref[l, 2:3, 0:H]
        ln1g = lsm_ref[l, 3:4, 0:H]
        ln1b = lsm_ref[l, 4:5, 0:H]
        bo2  = lsm_ref[l, 5:6, 0:H]
        ln2g = lsm_ref[l, 6:7, 0:H]
        ln2b = lsm_ref[l, 7:8, 0:H]

        # Fused QKV projection on the full (B*S, H) slab (bf16 MXU, f32 acc).
        qkv = jnp.dot(x.astype(bf16), wqkv_ref[l],
                      preferred_element_type=jnp.float32) + bqkv        # (BS, 3H)
        qkv3 = qkv.reshape(B, S, 3 * H)          # leading-dim split only: free

        ctx_heads = []
        for h in range(NUM_HEADS):               # static unroll over heads
            c0 = h * HEAD_DIM
            qh = qkv3[:, :, c0:c0 + HEAD_DIM]                 # scale pre-folded
            kh = qkv3[:, :, H + c0:H + c0 + HEAD_DIM]
            vh = qkv3[:, :, 2 * H + c0:2 * H + c0 + HEAD_DIM]
            # Batched scores (contraction over head_dim; no transpose materialized).
            s = jnp.einsum('bqd,bkd->bqk', qh, kh,
                           preferred_element_type=jnp.float32) + bias   # (B, S, S)
            s = s - jnp.max(s, axis=-1, keepdims=True)
            p = jnp.exp(s)
            # approx reciprocal (EUP slot); fine for inference, not bit-exact.
            p = p * pl.reciprocal(jnp.sum(p, axis=-1, keepdims=True), approx=True)
            ctx_heads.append(jnp.einsum('bqk,bkd->bqd', p, vh,
                                        preferred_element_type=jnp.float32))

        # Single output projection per layer on the merged head context.
        ctx = jnp.concatenate(ctx_heads, axis=-1).reshape(BS, H)
        attn = jnp.dot(ctx.astype(bf16), wo_ref[l],
                       preferred_element_type=jnp.float32) + bo
        h1 = _layer_norm(x + attn, ln1g, ln1b)

        ff = jnp.dot(h1.astype(bf16), wi_ref[l],
                     preferred_element_type=jnp.float32) + bi
        ff = _gelu_exact(ff)
        ff = jnp.dot(ff.astype(bf16), wo2_ref[l],
                     preferred_element_type=jnp.float32) + bo2
        x = _layer_norm(h1 + ff, ln2g, ln2b)

    # Pooler + classifier on all B*S rows (negligible extra compute at this
    # size; keeps the CLS row-gather out of the kernel).  Output is lane-dense
    # (128 lanes); the wrapper keeps CLS rows and the first NUM_CLASSES lanes.
    pooled = jnp.tanh(jnp.dot(x.astype(bf16), poolw_ref[...],
                              preferred_element_type=jnp.float32)
                      + vecs_ref[BS + 2:BS + 3, 0:H])
    out_ref[...] = (jnp.dot(pooled.astype(bf16), clsw_ref[...],
                            preferred_element_type=jnp.float32)
                    + vecs_ref[BS + 3:BS + 4, :])


# ---------------- parameter setup / packing -----------------------------------
def init_params(key):
    keys = iter(jax.random.split(key, 8 + NUM_LAYERS * 16))

    def nrm(shape, scale=0.02):
        return (scale * jax.random.normal(next(keys), shape)).astype(jnp.float32)

    params = {
        "word_emb": nrm((VOCAB, H)),
        "pos_emb": nrm((MAX_POS, H)),
        "type_emb": nrm((TYPE_VOCAB, H)),
        "emb_ln_g": jnp.ones((1, H), jnp.float32),
        "emb_ln_b": jnp.zeros((1, H), jnp.float32),
        "pool_w": nrm((H, H)),
        "pool_b": nrm((1, H), 0.01),
        "cls_w": nrm((H, NUM_CLASSES)),
        "cls_b": jnp.zeros((1, NUM_CLASSES), jnp.float32),
        "layers": [],
    }
    for _ in range(NUM_LAYERS):
        params["layers"].append({
            "wq": nrm((H, H)), "bq": nrm((1, H), 0.01),
            "wk": nrm((H, H)), "bk": nrm((1, H), 0.01),
            "wv": nrm((H, H)), "bv": nrm((1, H), 0.01),
            "wo": nrm((H, H)), "bo": nrm((1, H), 0.01),
            "ln1_g": jnp.ones((1, H), jnp.float32),
            "ln1_b": jnp.zeros((1, H), jnp.float32),
            "wi": nrm((H, INTER)), "bi": nrm((1, INTER), 0.01),
            "wo2": nrm((INTER, H)), "bo2": nrm((1, H), 0.01),
            "ln2_g": jnp.ones((1, H), jnp.float32),
            "ln2_b": jnp.zeros((1, H), jnp.float32),
        })
    return params


def pack_params(params):
    """Pack weights into stacked, kernel-friendly operands (bf16 matmul weights)."""
    bf16 = jnp.bfloat16
    scale = 1.0 / math.sqrt(HEAD_DIM)
    wqkv, wo, wi, wo2, lsm = [], [], [], [], []
    for lp in params["layers"]:
        # Fold the 1/sqrt(head_dim) attention scale into Wq / bq.
        wqkv.append(jnp.concatenate([lp["wq"] * scale, lp["wk"], lp["wv"]], axis=1))
        wo.append(lp["wo"]); wi.append(lp["wi"]); wo2.append(lp["wo2"])
        rows = jnp.zeros((8, 128), jnp.float32)
        rows = rows.at[0, :3 * H].set(
            jnp.concatenate([lp["bq"] * scale, lp["bk"], lp["bv"]], axis=1)[0])
        rows = rows.at[1, :INTER].set(lp["bi"][0])
        rows = rows.at[2, :H].set(lp["bo"][0])
        rows = rows.at[3, :H].set(lp["ln1_g"][0])
        rows = rows.at[4, :H].set(lp["ln1_b"][0])
        rows = rows.at[5, :H].set(lp["bo2"][0])
        rows = rows.at[6, :H].set(lp["ln2_g"][0])
        rows = rows.at[7, :H].set(lp["ln2_b"][0])
        lsm.append(rows)

    # Small f32 vectors in ONE operand: pos+type addend (pre-tiled over batch),
    # embedding LN, pooler bias, classifier bias (lane-padded to 128).
    pos_type = params["pos_emb"][:S] + params["type_emb"][0][None, :]   # (S, H)
    vecs = jnp.zeros((BS + 4, 128), jnp.float32)
    vecs = vecs.at[:BS, :H].set(jnp.tile(pos_type, (B, 1)))
    vecs = vecs.at[BS, :H].set(params["emb_ln_g"][0])
    vecs = vecs.at[BS + 1, :H].set(params["emb_ln_b"][0])
    vecs = vecs.at[BS + 2, :H].set(params["pool_b"][0])
    vecs = vecs.at[BS + 3, :NUM_CLASSES].set(params["cls_b"][0])

    wemb = jnp.zeros((VOCAB_PAD, H), jnp.float32).at[:VOCAB].set(params["word_emb"])
    cls_w = jnp.zeros((H, NCLS_PAD), jnp.float32).at[:, :NUM_CLASSES].set(params["cls_w"])

    return {
        "wemb": wemb.astype(bf16),
        "vecs": vecs,
        "wqkv": jnp.stack(wqkv).astype(bf16),
        "wo": jnp.stack(wo).astype(bf16),
        "wi": jnp.stack(wi).astype(bf16),
        "wo2": jnp.stack(wo2).astype(bf16),
        "lsm": jnp.stack(lsm),
        "pool_w": params["pool_w"].astype(bf16),
        "cls_w": cls_w.astype(bf16),
    }


# ---------------- model glue ---------------------------------------------------
def simple_bert_classifier_forward(input_ids, attention_mask, fused):
    # The embedding gather, mask-bias math, encoder, pooler and classifier all
    # run inside one Pallas kernel; the wrapper only reshapes ids and slices
    # the CLS rows / real class lanes out of the lane-dense kernel output.
    ids = input_ids.reshape(BS, 1).astype(jnp.int32)
    mask = attention_mask.astype(jnp.int32)

    vmem = pl.BlockSpec(memory_space=pltpu.MemorySpace.VMEM)
    out = pl.pallas_call(
        fused_bert_kernel,
        out_shape=jax.ShapeDtypeStruct((BS, NCLS_PAD), jnp.float32),
        in_specs=[vmem] * 11,
        out_specs=vmem,
    )(ids, mask, fused["wemb"], fused["vecs"],
      fused["wqkv"], fused["wo"], fused["wi"], fused["wo2"], fused["lsm"],
      fused["pool_w"], fused["cls_w"])

    # Keep only CLS rows (position 0 of each sequence) and real class lanes.
    return out.reshape(B, S, NCLS_PAD)[:, 0, :NUM_CLASSES]   # [B, 2]


# TODO(synk): loading real 'bert-base-uncased' pretrained weights / tokenizer has
# no in-script equivalent; weights are synthetic and deterministically initialized.

if __name__ == "__main__":
    root = jax.random.PRNGKey(0)
    k_param, k_ids = jax.random.split(root)
    params = init_params(k_param)
    fused = pack_params(params)

    input_ids = jax.random.randint(k_ids, (B, S), 0, VOCAB, dtype=jnp.int32)
    # first example: full length, second example: last 2 tokens are padding
    attention_mask = (jnp.arange(S)[None, :] < jnp.array([[S], [S - 2]])).astype(jnp.int32)

    logits = simple_bert_classifier_forward(input_ids, attention_mask, fused)
    logits = jax.block_until_ready(logits)
    assert logits.shape == (B, NUM_CLASSES) and logits.dtype == jnp.float32
    print("KERNEL_OK")
</pallas_src>

<mosaic_0001>
module attributes {stable_mosaic.version = 11 : i64} {
  func.func @fused_bert_kernel(%arg0: memref<16x1xi32, #tpu.memory_space<vmem>>, %arg1: memref<2x8xi32, #tpu.memory_space<vmem>>, %arg2: memref<128x32xbf16, #tpu.memory_space<vmem>>, %arg3: memref<20x128xf32, #tpu.memory_space<vmem>>, %arg4: memref<2x32x96xbf16, #tpu.memory_space<vmem>>, %arg5: memref<2x32x32xbf16, #tpu.memory_space<vmem>>, %arg6: memref<2x32x64xbf16, #tpu.memory_space<vmem>>, %arg7: memref<2x64x32xbf16, #tpu.memory_space<vmem>>, %arg8: memref<2x8x128xf32, #tpu.memory_space<vmem>>, %arg9: memref<32x32xbf16, #tpu.memory_space<vmem>>, %arg10: memref<32x128xbf16, #tpu.memory_space<vmem>>, %arg11: memref<16x128xf32, #tpu.memory_space<vmem>>) attributes {dimension_semantics = [], scalar_prefetch = 0 : i64, scratch_operands = 0 : i64, tpu.core_type = #tpu.core_type<tc>} {
    %c0 = arith.constant 0 : index
    %c0_0 = arith.constant 0 : index
    %0 = vector.load %arg0[%c0, %c0_0] : memref<16x1xi32, #tpu.memory_space<vmem>>, vector<16x1xi32>
    %1 = tpu.iota {dimensions = array<i32: 1>} : vector<16x128xi32>
    %2 = vector.broadcast %0 : vector<16x1xi32> to vector<16x128xi32>
    %3 = arith.cmpi eq, %2, %1 : vector<16x128xi32>
    %cst = arith.constant 1.000000e+00 : f32
    %cst_1 = arith.constant 0.000000e+00 : f32
    %4 = vector.broadcast %cst : f32 to vector<16x128xf32>
    %5 = vector.broadcast %cst_1 : f32 to vector<16x128xf32>
    %6 = arith.select %3, %4, %5 : vector<16x128xi1>, vector<16x128xf32>
    %7 = arith.truncf %6 : vector<16x128xf32> to vector<16x128xbf16>
    %c0_2 = arith.constant 0 : index
    %c0_3 = arith.constant 0 : index
    %8 = vector.load %arg2[%c0_2, %c0_3] : memref<128x32xbf16, #tpu.memory_space<vmem>>, vector<128x32xbf16>
    %cst_4 = arith.constant dense<0.000000e+00> : vector<16x32xf32>
    %9 = tpu.matmul %7, %8, %cst_4 {dimension_numbers = #tpu.dot_dimension_numbers<[1], [0], [0], [1], [0, 0, 1, 1], [], []>} : vector<16x128xbf16>, vector<128x32xbf16>, vector<16x32xf32> -> vector<16x32xf32>
    %c0_5 = arith.constant 0 : index
    %c0_6 = arith.constant 0 : index
    %10 = vector.load %arg3[%c0_5, %c0_6] : memref<20x128xf32, #tpu.memory_space<vmem>>, vector<16x32xf32>
    %11 = arith.addf %9, %10 : vector<16x32xf32>
    %c16 = arith.constant 16 : index
    %c0_7 = arith.constant 0 : index
    %12 = vector.load %arg3[%c16, %c0_7] : memref<20x128xf32, #tpu.memory_space<vmem>>, vector<1x32xf32>
    %c17 = arith.constant 17 : index
    %c0_8 = arith.constant 0 : index
    %13 = vector.load %arg3[%c17, %c0_8] : memref<20x128xf32, #tpu.memory_space<vmem>>, vector<1x32xf32>
    %cst_9 = arith.constant dense<0.000000e+00> : vector<16xf32>
    %14 = vector.multi_reduction <add>, %11, %cst_9 [1] : vector<16x32xf32> to vector<16xf32>
    %15 = vector.shape_cast %14 : vector<16xf32> to vector<16x1xf32>
    %cst_10 = arith.constant 3.200000e+01 : f32
    %16 = vector.broadcast %cst_10 : f32 to vector<16x1xf32>
    %17 = arith.divf %15, %16 : vector<16x1xf32>
    %18 = vector.broadcast %17 : vector<16x1xf32> to vector<16x32xf32>
    %19 = arith.subf %11, %18 : vector<16x32xf32>
    %20 = arith.mulf %19, %19 : vector<16x32xf32>
    %cst_11 = arith.constant dense<0.000000e+00> : vector<16xf32>
    %21 = vector.multi_reduction <add>, %20, %cst_11 [1] : vector<16x32xf32> to vector<16xf32>
    %22 = vector.shape_cast %21 : vector<16xf32> to vector<16x1xf32>
    %cst_12 = arith.constant 3.200000e+01 : f32
    %23 = vector.broadcast %cst_12 : f32 to vector<16x1xf32>
    %24 = arith.divf %22, %23 : vector<16x1xf32>
    %25 = vector.broadcast %17 : vector<16x1xf32> to vector<16x32xf32>
    %26 = arith.subf %11, %25 : vector<16x32xf32>
    %cst_13 = arith.constant 9.99999996E-13 : f32
    %27 = vector.broadcast %cst_13 : f32 to vector<16x1xf32>
    %28 = arith.addf %24, %27 : vector<16x1xf32>
    %29 = math.rsqrt %28 : vector<16x1xf32>
    %30 = vector.broadcast %29 : vector<16x1xf32> to vector<16x32xf32>
    %31 = arith.mulf %26, %30 : vector<16x32xf32>
    %32 = vector.broadcast %12 : vector<1x32xf32> to vector<16x32xf32>
    %33 = arith.mulf %31, %32 : vector<16x32xf32>
    %34 = vector.broadcast %13 : vector<1x32xf32> to vector<16x32xf32>
    %35 = arith.addf %33, %34 : vector<16x32xf32>
    %c0_14 = arith.constant 0 : index
    %c0_15 = arith.constant 0 : index
    %36 = vector.load %arg1[%c0_14, %c0_15] : memref<2x8xi32, #tpu.memory_space<vmem>>, vector<2x8xi32>
    %37 = arith.sitofp %36 : vector<2x8xi32> to vector<2x8xf32>
    %cst_16 = arith.constant 1.000000e+00 : f32
    %38 = vector.broadcast %cst_16 : f32 to vector<2x8xf32>
    %39 = arith.subf %38, %37 : vector<2x8xf32>
    %cst_17 = arith.constant -1.000000e+09 : f32
    %40 = vector.broadcast %cst_17 : f32 to vector<2x8xf32>
    %41 = arith.mulf %39, %40 : vector<2x8xf32>
    %42 = vector.shape_cast %41 : vector<2x8xf32> to vector<2x1x8xf32>
    %43 = vector.shape_cast %42 : vector<2x1x8xf32> to vector<2x1x8xf32>
    %44 = vector.broadcast %43 : vector<2x1x8xf32> to vector<2x8x8xf32>
    %c0_18 = arith.constant 0 : index
    %c0_19 = arith.constant 0 : index
    %c0_20 = arith.constant 0 : index
    %45 = vector.load %arg8[%c0_18, %c0_19, %c0_20] : memref<2x8x128xf32, #tpu.memory_space<vmem>>, vector<1x1x96xf32>
    %46 = vector.shape_cast %45 : vector<1x1x96xf32> to vector<1x96xf32>
    %c0_21 = arith.constant 0 : index
    %c1 = arith.constant 1 : index
    %c0_22 = arith.constant 0 : index
    %47 = vector.load %arg8[%c0_21, %c1, %c0_22] : memref<2x8x128xf32, #tpu.memory_space<vmem>>, vector<1x1x64xf32>
    %48 = vector.shape_cast %47 : vector<1x1x64xf32> to vector<1x64xf32>
    %c0_23 = arith.constant 0 : index
    %c2 = arith.constant 2 : index
    %c0_24 = arith.constant 0 : index
    %49 = vector.load %arg8[%c0_23, %c2, %c0_24] : memref<2x8x128xf32, #tpu.memory_space<vmem>>, vector<1x1x32xf32>
    %50 = vector.shape_cast %49 : vector<1x1x32xf32> to vector<1x32xf32>
    %c0_25 = arith.constant 0 : index
    %c3 = arith.constant 3 : index
    %c0_26 = arith.constant 0 : index
    %51 = vector.load %arg8[%c0_25, %c3, %c0_26] : memref<2x8x128xf32, #tpu.memory_space<vmem>>, vector<1x1x32xf32>
    %52 = vector.shape_cast %51 : vector<1x1x32xf32> to vector<1x32xf32>
    %c0_27 = arith.constant 0 : index
    %c4 = arith.constant 4 : index
    %c0_28 = arith.constant 0 : index
    %53 = vector.load %arg8[%c0_27, %c4, %c0_28] : memref<2x8x128xf32, #tpu.memory_space<vmem>>, vector<1x1x32xf32>
    %54 = vector.shape_cast %53 : vector<1x1x32xf32> to vector<1x32xf32>
    %c0_29 = arith.constant 0 : index
    %c5 = arith.constant 5 : index
    %c0_30 = arith.constant 0 : index
    %55 = vector.load %arg8[%c0_29, %c5, %c0_30] : memref<2x8x128xf32, #tpu.memory_space<vmem>>, vector<1x1x32xf32>
    %56 = vector.shape_cast %55 : vector<1x1x32xf32> to vector<1x32xf32>
    %c0_31 = arith.constant 0 : index
    %c6 = arith.constant 6 : index
    %c0_32 = arith.constant 0 : index
    %57 = vector.load %arg8[%c0_31, %c6, %c0_32] : memref<2x8x128xf32, #tpu.memory_space<vmem>>, vector<1x1x32xf32>
    %58 = vector.shape_cast %57 : vector<1x1x32xf32> to vector<1x32xf32>
    %c0_33 = arith.constant 0 : index
    %c7 = arith.constant 7 : index
    %c0_34 = arith.constant 0 : index
    %59 = vector.load %arg8[%c0_33, %c7, %c0_34] : memref<2x8x128xf32, #tpu.memory_space<vmem>>, vector<1x1x32xf32>
    %60 = vector.shape_cast %59 : vector<1x1x32xf32> to vector<1x32xf32>
    %61 = arith.truncf %35 : vector<16x32xf32> to vector<16x32xbf16>
    %c0_35 = arith.constant 0 : index
    %c0_36 = arith.constant 0 : index
    %c0_37 = arith.constant 0 : index
    %62 = vector.load %arg4[%c0_35, %c0_36, %c0_37] : memref<2x32x96xbf16, #tpu.memory_space<vmem>>, vector<1x32x96xbf16>
    %63 = vector.shape_cast %62 : vector<1x32x96xbf16> to vector<32x96xbf16>
    %cst_38 = arith.constant dense<0.000000e+00> : vector<16x96xf32>
    %64 = tpu.matmul %61, %63, %cst_38 {dimension_numbers = #tpu.dot_dimension_numbers<[1], [0], [0], [1], [0, 0, 1, 1], [], []>} : vector<16x32xbf16>, vector<32x96xbf16>, vector<16x96xf32> -> vector<16x96xf32>
    %65 = vector.broadcast %46 : vector<1x96xf32> to vector<16x96xf32>
    %66 = arith.addf %64, %65 : vector<16x96xf32>
    %67 = vector.shape_cast %66 : vector<16x96xf32> to vector<2x8x96xf32>
    %68 = vector.extract_strided_slice %67 {offsets = [0, 0, 0], sizes = [2, 8, 16], strides = [1, 1, 1]} : vector<2x8x96xf32> to vector<2x8x16xf32>
    %69 = vector.extract_strided_slice %67 {offsets = [0, 0, 32], sizes = [2, 8, 16], strides = [1, 1, 1]} : vector<2x8x96xf32> to vector<2x8x16xf32>
    %70 = vector.extract_strided_slice %67 {offsets = [0, 0, 64], sizes = [2, 8, 16], strides = [1, 1, 1]} : vector<2x8x96xf32> to vector<2x8x16xf32>
    "tpu.trace_start"() <{level = 10 : i32, message = "bqd,bkd->bqk"}> : () -> ()
    %cst_39 = arith.constant dense<0.000000e+00> : vector<2x8x8xf32>
    %71 = tpu.matmul %68, %69, %cst_39 {dimension_numbers = #tpu.dot_dimension_numbers<[2], [2], [1], [1], [0, 0, 0, 1, 1, 1], [0], [0]>} : vector<2x8x16xf32>, vector<2x8x16xf32>, vector<2x8x8xf32> -> vector<2x8x8xf32>
    "tpu.trace_stop"() : () -> ()
    %72 = arith.addf %71, %44 : vector<2x8x8xf32>
    %cst_40 = arith.constant dense<0xFF800000> : vector<2x8xf32>
    %73 = vector.multi_reduction <maximumf>, %72, %cst_40 [2] : vector<2x8x8xf32> to vector<2x8xf32>
    %74 = vector.shape_cast %73 : vector<2x8xf32> to vector<2x8x1xf32>
    %75 = vector.broadcast %74 : vector<2x8x1xf32> to vector<2x8x8xf32>
    %76 = arith.subf %72, %75 : vector<2x8x8xf32>
    %77 = math.exp %76 : vector<2x8x8xf32>
    %cst_41 = arith.constant dense<0.000000e+00> : vector<2x8xf32>
    %78 = vector.multi_reduction <add>, %77, %cst_41 [2] : vector<2x8x8xf32> to vector<2x8xf32>
    %79 = vector.shape_cast %78 : vector<2x8xf32> to vector<2x8x1xf32>
    %80 = tpu.reciprocal %79 {approx = true} : vector<2x8x1xf32> -> vector<2x8x1xf32>
    %81 = vector.broadcast %80 : vector<2x8x1xf32> to vector<2x8x8xf32>
    %82 = arith.mulf %77, %81 : vector<2x8x8xf32>
    "tpu.trace_start"() <{level = 10 : i32, message = "bqk,bkd->bqd"}> : () -> ()
    %cst_42 = arith.constant dense<0.000000e+00> : vector<2x8x16xf32>
    %83 = tpu.matmul %82, %70, %cst_42 {dimension_numbers = #tpu.dot_dimension_numbers<[2], [1], [1], [2], [0, 0, 0, 1, 1, 2], [0], [0]>} : vector<2x8x8xf32>, vector<2x8x16xf32>, vector<2x8x16xf32> -> vector<2x8x16xf32>
    "tpu.trace_stop"() : () -> ()
    %84 = vector.extract_strided_slice %67 {offsets = [0, 0, 16], sizes = [2, 8, 16], strides = [1, 1, 1]} : vector<2x8x96xf32> to vector<2x8x16xf32>
    %85 = vector.extract_strided_slice %67 {offsets = [0, 0, 48], sizes = [2, 8, 16], strides = [1, 1, 1]} : vector<2x8x96xf32> to vector<2x8x16xf32>
    %86 = vector.extract_strided_slice %67 {offsets = [0, 0, 80], sizes = [2, 8, 16], strides = [1, 1, 1]} : vector<2x8x96xf32> to vector<2x8x16xf32>
    "tpu.trace_start"() <{level = 10 : i32, message = "bqd,bkd->bqk"}> : () -> ()
    %cst_43 = arith.constant dense<0.000000e+00> : vector<2x8x8xf32>
    %87 = tpu.matmul %84, %85, %cst_43 {dimension_numbers = #tpu.dot_dimension_numbers<[2], [2], [1], [1], [0, 0, 0, 1, 1, 1], [0], [0]>} : vector<2x8x16xf32>, vector<2x8x16xf32>, vector<2x8x8xf32> -> vector<2x8x8xf32>
    "tpu.trace_stop"() : () -> ()
    %88 = arith.addf %87, %44 : vector<2x8x8xf32>
    %cst_44 = arith.constant dense<0xFF800000> : vector<2x8xf32>
    %89 = vector.multi_reduction <maximumf>, %88, %cst_44 [2] : vector<2x8x8xf32> to vector<2x8xf32>
    %90 = vector.shape_cast %89 : vector<2x8xf32> to vector<2x8x1xf32>
    %91 = vector.broadcast %90 : vector<2x8x1xf32> to vector<2x8x8xf32>
    %92 = arith.subf %88, %91 : vector<2x8x8xf32>
    %93 = math.exp %92 : vector<2x8x8xf32>
    %cst_45 = arith.constant dense<0.000000e+00> : vector<2x8xf32>
    %94 = vector.multi_reduction <add>, %93, %cst_45 [2] : vector<2x8x8xf32> to vector<2x8xf32>
    %95 = vector.shape_cast %94 : vector<2x8xf32> to vector<2x8x1xf32>
    %96 = tpu.reciprocal %95 {approx = true} : vector<2x8x1xf32> -> vector<2x8x1xf32>
    %97 = vector.broadcast %96 : vector<2x8x1xf32> to vector<2x8x8xf32>
    %98 = arith.mulf %93, %97 : vector<2x8x8xf32>
    "tpu.trace_start"() <{level = 10 : i32, message = "bqk,bkd->bqd"}> : () -> ()
    %cst_46 = arith.constant dense<0.000000e+00> : vector<2x8x16xf32>
    %99 = tpu.matmul %98, %86, %cst_46 {dimension_numbers = #tpu.dot_dimension_numbers<[2], [1], [1], [2], [0, 0, 0, 1, 1, 2], [0], [0]>} : vector<2x8x8xf32>, vector<2x8x16xf32>, vector<2x8x16xf32> -> vector<2x8x16xf32>
    "tpu.trace_stop"() : () -> ()
    %100 = tpu.concatenate %83, %99 in 2 : vector<2x8x16xf32>, vector<2x8x16xf32> -> vector<2x8x32xf32>
    %101 = vector.shape_cast %100 : vector<2x8x32xf32> to vector<16x32xf32>
    %102 = arith.truncf %101 : vector<16x32xf32> to vector<16x32xbf16>
    %c0_47 = arith.constant 0 : index
    %c0_48 = arith.constant 0 : index
    %c0_49 = arith.constant 0 : index
    %103 = vector.load %arg5[%c0_47, %c0_48, %c0_49] : memref<2x32x32xbf16, #tpu.memory_space<vmem>>, vector<1x32x32xbf16>
    %104 = vector.shape_cast %103 : vector<1x32x32xbf16> to vector<32x32xbf16>
    %cst_50 = arith.constant dense<0.000000e+00> : vector<16x32xf32>
    %105 = tpu.matmul %102, %104, %cst_50 {dimension_numbers = #tpu.dot_dimension_numbers<[1], [0], [0], [1], [0, 0, 1, 1], [], []>} : vector<16x32xbf16>, vector<32x32xbf16>, vector<16x32xf32> -> vector<16x32xf32>
    %106 = vector.broadcast %50 : vector<1x32xf32> to vector<16x32xf32>
    %107 = arith.addf %105, %106 : vector<16x32xf32>
    %108 = arith.addf %35, %107 : vector<16x32xf32>
    %cst_51 = arith.constant dense<0.000000e+00> : vector<16xf32>
    %109 = vector.multi_reduction <add>, %108, %cst_51 [1] : vector<16x32xf32> to vector<16xf32>
    %110 = vector.shape_cast %109 : vector<16xf32> to vector<16x1xf32>
    %cst_52 = arith.constant 3.200000e+01 : f32
    %111 = vector.broadcast %cst_52 : f32 to vector<16x1xf32>
    %112 = arith.divf %110, %111 : vector<16x1xf32>
    %113 = vector.broadcast %112 : vector<16x1xf32> to vector<16x32xf32>
    %114 = arith.subf %108, %113 : vector<16x32xf32>
    %115 = arith.mulf %114, %114 : vector<16x32xf32>
    %cst_53 = arith.constant dense<0.000000e+00> : vector<16xf32>
    %116 = vector.multi_reduction <add>, %115, %cst_53 [1] : vector<16x32xf32> to vector<16xf32>
    %117 = vector.shape_cast %116 : vector<16xf32> to vector<16x1xf32>
    %cst_54 = arith.constant 3.200000e+01 : f32
    %118 = vector.broadcast %cst_54 : f32 to vector<16x1xf32>
    %119 = arith.divf %117, %118 : vector<16x1xf32>
    %120 = vector.broadcast %112 : vector<16x1xf32> to vector<16x32xf32>
    %121 = arith.subf %108, %120 : vector<16x32xf32>
    %cst_55 = arith.constant 9.99999996E-13 : f32
    %122 = vector.broadcast %cst_55 : f32 to vector<16x1xf32>
    %123 = arith.addf %119, %122 : vector<16x1xf32>
    %124 = math.rsqrt %123 : vector<16x1xf32>
    %125 = vector.broadcast %124 : vector<16x1xf32> to vector<16x32xf32>
    %126 = arith.mulf %121, %125 : vector<16x32xf32>
    %127 = vector.broadcast %52 : vector<1x32xf32> to vector<16x32xf32>
    %128 = arith.mulf %126, %127 : vector<16x32xf32>
    %129 = vector.broadcast %54 : vector<1x32xf32> to vector<16x32xf32>
    %130 = arith.addf %128, %129 : vector<16x32xf32>
    %131 = arith.truncf %130 : vector<16x32xf32> to vector<16x32xbf16>
    %c0_56 = arith.constant 0 : index
    %c0_57 = arith.constant 0 : index
    %c0_58 = arith.constant 0 : index
    %132 = vector.load %arg6[%c0_56, %c0_57, %c0_58] : memref<2x32x64xbf16, #tpu.memory_space<vmem>>, vector<1x32x64xbf16>
    %133 = vector.shape_cast %132 : vector<1x32x64xbf16> to vector<32x64xbf16>
    %cst_59 = arith.constant dense<0.000000e+00> : vector<16x64xf32>
    %134 = tpu.matmul %131, %133, %cst_59 {dimension_numbers = #tpu.dot_dimension_numbers<[1], [0], [0], [1], [0, 0, 1, 1], [], []>} : vector<16x32xbf16>, vector<32x64xbf16>, vector<16x64xf32> -> vector<16x64xf32>
    %135 = vector.broadcast %48 : vector<1x64xf32> to vector<16x64xf32>
    %136 = arith.addf %134, %135 : vector<16x64xf32>
    %cst_60 = arith.constant 5.000000e-01 : f32
    %137 = vector.broadcast %cst_60 : f32 to vector<16x64xf32>
    %138 = arith.mulf %137, %136 : vector<16x64xf32>
    %cst_61 = arith.constant 0.707106769 : f32
    %139 = vector.broadcast %cst_61 : f32 to vector<16x64xf32>
    %140 = arith.mulf %136, %139 : vector<16x64xf32>
    %141 = math.erf %140 : vector<16x64xf32>
    %cst_62 = arith.constant 1.000000e+00 : f32
    %142 = vector.broadcast %cst_62 : f32 to vector<16x64xf32>
    %143 = arith.addf %142, %141 : vector<16x64xf32>
    %144 = arith.mulf %138, %143 : vector<16x64xf32>
    %145 = arith.truncf %144 : vector<16x64xf32> to vector<16x64xbf16>
    %c0_63 = arith.constant 0 : index
    %c0_64 = arith.constant 0 : index
    %c0_65 = arith.constant 0 : index
    %146 = vector.load %arg7[%c0_63, %c0_64, %c0_65] : memref<2x64x32xbf16, #tpu.memory_space<vmem>>, vector<1x64x32xbf16>
    %147 = vector.shape_cast %146 : vector<1x64x32xbf16> to vector<64x32xbf16>
    %cst_66 = arith.constant dense<0.000000e+00> : vector<16x32xf32>
    %148 = tpu.matmul %145, %147, %cst_66 {dimension_numbers = #tpu.dot_dimension_numbers<[1], [0], [0], [1], [0, 0, 1, 1], [], []>} : vector<16x64xbf16>, vector<64x32xbf16>, vector<16x32xf32> -> vector<16x32xf32>
    %149 = vector.broadcast %56 : vector<1x32xf32> to vector<16x32xf32>
    %150 = arith.addf %148, %149 : vector<16x32xf32>
    %151 = arith.addf %130, %150 : vector<16x32xf32>
    %cst_67 = arith.constant dense<0.000000e+00> : vector<16xf32>
    %152 = vector.multi_reduction <add>, %151, %cst_67 [1] : vector<16x32xf32> to vector<16xf32>
    %153 = vector.shape_cast %152 : vector<16xf32> to vector<16x1xf32>
    %cst_68 = arith.constant 3.200000e+01 : f32
    %154 = vector.broadcast %cst_68 : f32 to vector<16x1xf32>
    %155 = arith.divf %153, %154 : vector<16x1xf32>
    %156 = vector.broadcast %155 : vector<16x1xf32> to vector<16x32xf32>
    %157 = arith.subf %151, %156 : vector<16x32xf32>
    %158 = arith.mulf %157, %157 : vector<16x32xf32>
    %cst_69 = arith.constant dense<0.000000e+00> : vector<16xf32>
    %159 = vector.multi_reduction <add>, %158, %cst_69 [1] : vector<16x32xf32> to vector<16xf32>
    %160 = vector.shape_cast %159 : vector<16xf32> to vector<16x1xf32>
    %cst_70 = arith.constant 3.200000e+01 : f32
    %161 = vector.broadcast %cst_70 : f32 to vector<16x1xf32>
    %162 = arith.divf %160, %161 : vector<16x1xf32>
    %163 = vector.broadcast %155 : vector<16x1xf32> to vector<16x32xf32>
    %164 = arith.subf %151, %163 : vector<16x32xf32>
    %cst_71 = arith.constant 9.99999996E-13 : f32
    %165 = vector.broadcast %cst_71 : f32 to vector<16x1xf32>
    %166 = arith.addf %162, %165 : vector<16x1xf32>
    %167 = math.rsqrt %166 : vector<16x1xf32>
    %168 = vector.broadcast %167 : vector<16x1xf32> to vector<16x32xf32>
    %169 = arith.mulf %164, %168 : vector<16x32xf32>
    %170 = vector.broadcast %58 : vector<1x32xf32> to vector<16x32xf32>
    %171 = arith.mulf %169, %170 : vector<16x32xf32>
    %172 = vector.broadcast %60 : vector<1x32xf32> to vector<16x32xf32>
    %173 = arith.addf %171, %172 : vector<16x32xf32>
    %c1_72 = arith.constant 1 : index
    %c0_73 = arith.constant 0 : index
    %c0_74 = arith.constant 0 : index
    %174 = vector.load %arg8[%c1_72, %c0_73, %c0_74] : memref<2x8x128xf32, #tpu.memory_space<vmem>>, vector<1x1x96xf32>
    %175 = vector.shape_cast %174 : vector<1x1x96xf32> to vector<1x96xf32>
    %c1_75 = arith.constant 1 : index
    %c1_76 = arith.constant 1 : index
    %c0_77 = arith.constant 0 : index
    %176 = vector.load %arg8[%c1_75, %c1_76, %c0_77] : memref<2x8x128xf32, #tpu.memory_space<vmem>>, vector<1x1x64xf32>
    %177 = vector.shape_cast %176 : vector<1x1x64xf32> to vector<1x64xf32>
    %c1_78 = arith.constant 1 : index
    %c2_79 = arith.constant 2 : index
    %c0_80 = arith.constant 0 : index
    %178 = vector.load %arg8[%c1_78, %c2_79, %c0_80] : memref<2x8x128xf32, #tpu.memory_space<vmem>>, vector<1x1x32xf32>
    %179 = vector.shape_cast %178 : vector<1x1x32xf32> to vector<1x32xf32>
    %c1_81 = arith.constant 1 : index
    %c3_82 = arith.constant 3 : index
    %c0_83 = arith.constant 0 : index
    %180 = vector.load %arg8[%c1_81, %c3_82, %c0_83] : memref<2x8x128xf32, #tpu.memory_space<vmem>>, vector<1x1x32xf32>
    %181 = vector.shape_cast %180 : vector<1x1x32xf32> to vector<1x32xf32>
    %c1_84 = arith.constant 1 : index
    %c4_85 = arith.constant 4 : index
    %c0_86 = arith.constant 0 : index
    %182 = vector.load %arg8[%c1_84, %c4_85, %c0_86] : memref<2x8x128xf32, #tpu.memory_space<vmem>>, vector<1x1x32xf32>
    %183 = vector.shape_cast %182 : vector<1x1x32xf32> to vector<1x32xf32>
    %c1_87 = arith.constant 1 : index
    %c5_88 = arith.constant 5 : index
    %c0_89 = arith.constant 0 : index
    %184 = vector.load %arg8[%c1_87, %c5_88, %c0_89] : memref<2x8x128xf32, #tpu.memory_space<vmem>>, vector<1x1x32xf32>
    %185 = vector.shape_cast %184 : vector<1x1x32xf32> to vector<1x32xf32>
    %c1_90 = arith.constant 1 : index
    %c6_91 = arith.constant 6 : index
    %c0_92 = arith.constant 0 : index
    %186 = vector.load %arg8[%c1_90, %c6_91, %c0_92] : memref<2x8x128xf32, #tpu.memory_space<vmem>>, vector<1x1x32xf32>
    %187 = vector.shape_cast %186 : vector<1x1x32xf32> to vector<1x32xf32>
    %c1_93 = arith.constant 1 : index
    %c7_94 = arith.constant 7 : index
    %c0_95 = arith.constant 0 : index
    %188 = vector.load %arg8[%c1_93, %c7_94, %c0_95] : memref<2x8x128xf32, #tpu.memory_space<vmem>>, vector<1x1x32xf32>
    %189 = vector.shape_cast %188 : vector<1x1x32xf32> to vector<1x32xf32>
    %190 = arith.truncf %173 : vector<16x32xf32> to vector<16x32xbf16>
    %c1_96 = arith.constant 1 : index
    %c0_97 = arith.constant 0 : index
    %c0_98 = arith.constant 0 : index
    %191 = vector.load %arg4[%c1_96, %c0_97, %c0_98] : memref<2x32x96xbf16, #tpu.memory_space<vmem>>, vector<1x32x96xbf16>
    %192 = vector.shape_cast %191 : vector<1x32x96xbf16> to vector<32x96xbf16>
    %cst_99 = arith.constant dense<0.000000e+00> : vector<16x96xf32>
    %193 = tpu.matmul %190, %192, %cst_99 {dimension_numbers = #tpu.dot_dimension_numbers<[1], [0], [0], [1], [0, 0, 1, 1], [], []>} : vector<16x32xbf16>, vector<32x96xbf16>, vector<16x96xf32> -> vector<16x96xf32>
    %194 = vector.broadcast %175 : vector<1x96xf32> to vector<16x96xf32>
    %195 = arith.addf %193, %194 : vector<16x96xf32>
    %196 = vector.shape_cast %195 : vector<16x96xf32> to vector<2x8x96xf32>
    %197 = vector.extract_strided_slice %196 {offsets = [0, 0, 0], sizes = [2, 8, 16], strides = [1, 1, 1]} : vector<2x8x96xf32> to vector<2x8x16xf32>
    %198 = vector.extract_strided_slice %196 {offsets = [0, 0, 32], sizes = [2, 8, 16], strides = [1, 1, 1]} : vector<2x8x96xf32> to vector<2x8x16xf32>
    %199 = vector.extract_strided_slice %196 {offsets = [0, 0, 64], sizes = [2, 8, 16], strides = [1, 1, 1]} : vector<2x8x96xf32> to vector<2x8x16xf32>
    "tpu.trace_start"() <{level = 10 : i32, message = "bqd,bkd->bqk"}> : () -> ()
    %cst_100 = arith.constant dense<0.000000e+00> : vector<2x8x8xf32>
    %200 = tpu.matmul %197, %198, %cst_100 {dimension_numbers = #tpu.dot_dimension_numbers<[2], [2], [1], [1], [0, 0, 0, 1, 1, 1], [0], [0]>} : vector<2x8x16xf32>, vector<2x8x16xf32>, vector<2x8x8xf32> -> vector<2x8x8xf32>
    "tpu.trace_stop"() : () -> ()
    %201 = arith.addf %200, %44 : vector<2x8x8xf32>
    %cst_101 = arith.constant dense<0xFF800000> : vector<2x8xf32>
    %202 = vector.multi_reduction <maximumf>, %201, %cst_101 [2] : vector<2x8x8xf32> to vector<2x8xf32>
    %203 = vector.shape_cast %202 : vector<2x8xf32> to vector<2x8x1xf32>
    %204 = vector.broadcast %203 : vector<2x8x1xf32> to vector<2x8x8xf32>
    %205 = arith.subf %201, %204 : vector<2x8x8xf32>
    %206 = math.exp %205 : vector<2x8x8xf32>
    %cst_102 = arith.constant dense<0.000000e+00> : vector<2x8xf32>
    %207 = vector.multi_reduction <add>, %206, %cst_102 [2] : vector<2x8x8xf32> to vector<2x8xf32>
    %208 = vector.shape_cast %207 : vector<2x8xf32> to vector<2x8x1xf32>
    %209 = tpu.reciprocal %208 {approx = true} : vector<2x8x1xf32> -> vector<2x8x1xf32>
    %210 = vector.broadcast %209 : vector<2x8x1xf32> to vector<2x8x8xf32>
    %211 = arith.mulf %206, %210 : vector<2x8x8xf32>
    "tpu.trace_start"() <{level = 10 : i32, message = "bqk,bkd->bqd"}> : () -> ()
    %cst_103 = arith.constant dense<0.000000e+00> : vector<2x8x16xf32>
    %212 = tpu.matmul %211, %199, %cst_103 {dimension_numbers = #tpu.dot_dimension_numbers<[2], [1], [1], [2], [0, 0, 0, 1, 1, 2], [0], [0]>} : vector<2x8x8xf32>, vector<2x8x16xf32>, vector<2x8x16xf32> -> vector<2x8x16xf32>
    "tpu.trace_stop"() : () -> ()
    %213 = vector.extract_strided_slice %196 {offsets = [0, 0, 16], sizes = [2, 8, 16], strides = [1, 1, 1]} : vector<2x8x96xf32> to vector<2x8x16xf32>
    %214 = vector.extract_strided_slice %196 {offsets = [0, 0, 48], sizes = [2, 8, 16], strides = [1, 1, 1]} : vector<2x8x96xf32> to vector<2x8x16xf32>
    %215 = vector.extract_strided_slice %196 {offsets = [0, 0, 80], sizes = [2, 8, 16], strides = [1, 1, 1]} : vector<2x8x96xf32> to vector<2x8x16xf32>
    "tpu.trace_start"() <{level = 10 : i32, message = "bqd,bkd->bqk"}> : () -> ()
    %cst_104 = arith.constant dense<0.000000e+00> : vector<2x8x8xf32>
    %216 = tpu.matmul %213, %214, %cst_104 {dimension_numbers = #tpu.dot_dimension_numbers<[2], [2], [1], [1], [0, 0, 0, 1, 1, 1], [0], [0]>} : vector<2x8x16xf32>, vector<2x8x16xf32>, vector<2x8x8xf32> -> vector<2x8x8xf32>
    "tpu.trace_stop"() : () -> ()
    %217 = arith.addf %216, %44 : vector<2x8x8xf32>
    %cst_105 = arith.constant dense<0xFF800000> : vector<2x8xf32>
    %218 = vector.multi_reduction <maximumf>, %217, %cst_105 [2] : vector<2x8x8xf32> to vector<2x8xf32>
    %219 = vector.shape_cast %218 : vector<2x8xf32> to vector<2x8x1xf32>
    %220 = vector.broadcast %219 : vector<2x8x1xf32> to vector<2x8x8xf32>
    %221 = arith.subf %217, %220 : vector<2x8x8xf32>
    %222 = math.exp %221 : vector<2x8x8xf32>
    %cst_106 = arith.constant dense<0.000000e+00> : vector<2x8xf32>
    %223 = vector.multi_reduction <add>, %222, %cst_106 [2] : vector<2x8x8xf32> to vector<2x8xf32>
    %224 = vector.shape_cast %223 : vector<2x8xf32> to vector<2x8x1xf32>
    %225 = tpu.reciprocal %224 {approx = true} : vector<2x8x1xf32> -> vector<2x8x1xf32>
    %226 = vector.broadcast %225 : vector<2x8x1xf32> to vector<2x8x8xf32>
    %227 = arith.mulf %222, %226 : vector<2x8x8xf32>
    "tpu.trace_start"() <{level = 10 : i32, message = "bqk,bkd->bqd"}> : () -> ()
    %cst_107 = arith.constant dense<0.000000e+00> : vector<2x8x16xf32>
    %228 = tpu.matmul %227, %215, %cst_107 {dimension_numbers = #tpu.dot_dimension_numbers<[2], [1], [1], [2], [0, 0, 0, 1, 1, 2], [0], [0]>} : vector<2x8x8xf32>, vector<2x8x16xf32>, vector<2x8x16xf32> -> vector<2x8x16xf32>
    "tpu.trace_stop"() : () -> ()
    %229 = tpu.concatenate %212, %228 in 2 : vector<2x8x16xf32>, vector<2x8x16xf32> -> vector<2x8x32xf32>
    %230 = vector.shape_cast %229 : vector<2x8x32xf32> to vector<16x32xf32>
    %231 = arith.truncf %230 : vector<16x32xf32> to vector<16x32xbf16>
    %c1_108 = arith.constant 1 : index
    %c0_109 = arith.constant 0 : index
    %c0_110 = arith.constant 0 : index
    %232 = vector.load %arg5[%c1_108, %c0_109, %c0_110] : memref<2x32x32xbf16, #tpu.memory_space<vmem>>, vector<1x32x32xbf16>
    %233 = vector.shape_cast %232 : vector<1x32x32xbf16> to vector<32x32xbf16>
    %cst_111 = arith.constant dense<0.000000e+00> : vector<16x32xf32>
    %234 = tpu.matmul %231, %233, %cst_111 {dimension_numbers = #tpu.dot_dimension_numbers<[1], [0], [0], [1], [0, 0, 1, 1], [], []>} : vector<16x32xbf16>, vector<32x32xbf16>, vector<16x32xf32> -> vector<16x32xf32>
    %235 = vector.broadcast %179 : vector<1x32xf32> to vector<16x32xf32>
    %236 = arith.addf %234, %235 : vector<16x32xf32>
    %237 = arith.addf %173, %236 : vector<16x32xf32>
    %cst_112 = arith.constant dense<0.000000e+00> : vector<16xf32>
    %238 = vector.multi_reduction <add>, %237, %cst_112 [1] : vector<16x32xf32> to vector<16xf32>
    %239 = vector.shape_cast %238 : vector<16xf32> to vector<16x1xf32>
    %cst_113 = arith.constant 3.200000e+01 : f32
    %240 = vector.broadcast %cst_113 : f32 to vector<16x1xf32>
    %241 = arith.divf %239, %240 : vector<16x1xf32>
    %242 = vector.broadcast %241 : vector<16x1xf32> to vector<16x32xf32>
    %243 = arith.subf %237, %242 : vector<16x32xf32>
    %244 = arith.mulf %243, %243 : vector<16x32xf32>
    %cst_114 = arith.constant dense<0.000000e+00> : vector<16xf32>
    %245 = vector.multi_reduction <add>, %244, %cst_114 [1] : vector<16x32xf32> to vector<16xf32>
    %246 = vector.shape_cast %245 : vector<16xf32> to vector<16x1xf32>
    %cst_115 = arith.constant 3.200000e+01 : f32
    %247 = vector.broadcast %cst_115 : f32 to vector<16x1xf32>
    %248 = arith.divf %246, %247 : vector<16x1xf32>
    %249 = vector.broadcast %241 : vector<16x1xf32> to vector<16x32xf32>
    %250 = arith.subf %237, %249 : vector<16x32xf32>
    %cst_116 = arith.constant 9.99999996E-13 : f32
    %251 = vector.broadcast %cst_116 : f32 to vector<16x1xf32>
    %252 = arith.addf %248, %251 : vector<16x1xf32>
    %253 = math.rsqrt %252 : vector<16x1xf32>
    %254 = vector.broadcast %253 : vector<16x1xf32> to vector<16x32xf32>
    %255 = arith.mulf %250, %254 : vector<16x32xf32>
    %256 = vector.broadcast %181 : vector<1x32xf32> to vector<16x32xf32>
    %257 = arith.mulf %255, %256 : vector<16x32xf32>
    %258 = vector.broadcast %183 : vector<1x32xf32> to vector<16x32xf32>
    %259 = arith.addf %257, %258 : vector<16x32xf32>
    %260 = arith.truncf %259 : vector<16x32xf32> to vector<16x32xbf16>
    %c1_117 = arith.constant 1 : index
    %c0_118 = arith.constant 0 : index
    %c0_119 = arith.constant 0 : index
    %261 = vector.load %arg6[%c1_117, %c0_118, %c0_119] : memref<2x32x64xbf16, #tpu.memory_space<vmem>>, vector<1x32x64xbf16>
    %262 = vector.shape_cast %261 : vector<1x32x64xbf16> to vector<32x64xbf16>
    %cst_120 = arith.constant dense<0.000000e+00> : vector<16x64xf32>
    %263 = tpu.matmul %260, %262, %cst_120 {dimension_numbers = #tpu.dot_dimension_numbers<[1], [0], [0], [1], [0, 0, 1, 1], [], []>} : vector<16x32xbf16>, vector<32x64xbf16>, vector<16x64xf32> -> vector<16x64xf32>
    %264 = vector.broadcast %177 : vector<1x64xf32> to vector<16x64xf32>
    %265 = arith.addf %263, %264 : vector<16x64xf32>
    %cst_121 = arith.constant 5.000000e-01 : f32
    %266 = vector.broadcast %cst_121 : f32 to vector<16x64xf32>
    %267 = arith.mulf %266, %265 : vector<16x64xf32>
    %cst_122 = arith.constant 0.707106769 : f32
    %268 = vector.broadcast %cst_122 : f32 to vector<16x64xf32>
    %269 = arith.mulf %265, %268 : vector<16x64xf32>
    %270 = math.erf %269 : vector<16x64xf32>
    %cst_123 = arith.constant 1.000000e+00 : f32
    %271 = vector.broadcast %cst_123 : f32 to vector<16x64xf32>
    %272 = arith.addf %271, %270 : vector<16x64xf32>
    %273 = arith.mulf %267, %272 : vector<16x64xf32>
    %274 = arith.truncf %273 : vector<16x64xf32> to vector<16x64xbf16>
    %c1_124 = arith.constant 1 : index
    %c0_125 = arith.constant 0 : index
    %c0_126 = arith.constant 0 : index
    %275 = vector.load %arg7[%c1_124, %c0_125, %c0_126] : memref<2x64x32xbf16, #tpu.memory_space<vmem>>, vector<1x64x32xbf16>
    %276 = vector.shape_cast %275 : vector<1x64x32xbf16> to vector<64x32xbf16>
    %cst_127 = arith.constant dense<0.000000e+00> : vector<16x32xf32>
    %277 = tpu.matmul %274, %276, %cst_127 {dimension_numbers = #tpu.dot_dimension_numbers<[1], [0], [0], [1], [0, 0, 1, 1], [], []>} : vector<16x64xbf16>, vector<64x32xbf16>, vector<16x32xf32> -> vector<16x32xf32>
    %278 = vector.broadcast %185 : vector<1x32xf32> to vector<16x32xf32>
    %279 = arith.addf %277, %278 : vector<16x32xf32>
    %280 = arith.addf %259, %279 : vector<16x32xf32>
    %cst_128 = arith.constant dense<0.000000e+00> : vector<16xf32>
    %281 = vector.multi_reduction <add>, %280, %cst_128 [1] : vector<16x32xf32> to vector<16xf32>
    %282 = vector.shape_cast %281 : vector<16xf32> to vector<16x1xf32>
    %cst_129 = arith.constant 3.200000e+01 : f32
    %283 = vector.broadcast %cst_129 : f32 to vector<16x1xf32>
    %284 = arith.divf %282, %283 : vector<16x1xf32>
    %285 = vector.broadcast %284 : vector<16x1xf32> to vector<16x32xf32>
    %286 = arith.subf %280, %285 : vector<16x32xf32>
    %287 = arith.mulf %286, %286 : vector<16x32xf32>
    %cst_130 = arith.constant dense<0.000000e+00> : vector<16xf32>
    %288 = vector.multi_reduction <add>, %287, %cst_130 [1] : vector<16x32xf32> to vector<16xf32>
    %289 = vector.shape_cast %288 : vector<16xf32> to vector<16x1xf32>
    %cst_131 = arith.constant 3.200000e+01 : f32
    %290 = vector.broadcast %cst_131 : f32 to vector<16x1xf32>
    %291 = arith.divf %289, %290 : vector<16x1xf32>
    %292 = vector.broadcast %284 : vector<16x1xf32> to vector<16x32xf32>
    %293 = arith.subf %280, %292 : vector<16x32xf32>
    %cst_132 = arith.constant 9.99999996E-13 : f32
    %294 = vector.broadcast %cst_132 : f32 to vector<16x1xf32>
    %295 = arith.addf %291, %294 : vector<16x1xf32>
    %296 = math.rsqrt %295 : vector<16x1xf32>
    %297 = vector.broadcast %296 : vector<16x1xf32> to vector<16x32xf32>
    %298 = arith.mulf %293, %297 : vector<16x32xf32>
    %299 = vector.broadcast %187 : vector<1x32xf32> to vector<16x32xf32>
    %300 = arith.mulf %298, %299 : vector<16x32xf32>
    %301 = vector.broadcast %189 : vector<1x32xf32> to vector<16x32xf32>
    %302 = arith.addf %300, %301 : vector<16x32xf32>
    %303 = arith.truncf %302 : vector<16x32xf32> to vector<16x32xbf16>
    %c0_133 = arith.constant 0 : index
    %c0_134 = arith.constant 0 : index
    %304 = vector.load %arg9[%c0_133, %c0_134] : memref<32x32xbf16, #tpu.memory_space<vmem>>, vector<32x32xbf16>
    %cst_135 = arith.constant dense<0.000000e+00> : vector<16x32xf32>
    %305 = tpu.matmul %303, %304, %cst_135 {dimension_numbers = #tpu.dot_dimension_numbers<[1], [0], [0], [1], [0, 0, 1, 1], [], []>} : vector<16x32xbf16>, vector<32x32xbf16>, vector<16x32xf32> -> vector<16x32xf32>
    %c18 = arith.constant 18 : index
    %c0_136 = arith.constant 0 : index
    %306 = vector.load %arg3[%c18, %c0_136] : memref<20x128xf32, #tpu.memory_space<vmem>>, vector<1x32xf32>
    %307 = vector.broadcast %306 : vector<1x32xf32> to vector<16x32xf32>
    %308 = arith.addf %305, %307 : vector<16x32xf32>
    %309 = math.tanh %308 : vector<16x32xf32>
    %310 = arith.truncf %309 : vector<16x32xf32> to vector<16x32xbf16>
    %c0_137 = arith.constant 0 : index
    %c0_138 = arith.constant 0 : index
    %311 = vector.load %arg10[%c0_137, %c0_138] : memref<32x128xbf16, #tpu.memory_space<vmem>>, vector<32x128xbf16>
    %cst_139 = arith.constant dense<0.000000e+00> : vector<16x128xf32>
    %312 = tpu.matmul %310, %311, %cst_139 {dimension_numbers = #tpu.dot_dimension_numbers<[1], [0], [0], [1], [0, 0, 1, 1], [], []>} : vector<16x32xbf16>, vector<32x128xbf16>, vector<16x128xf32> -> vector<16x128xf32>
    %c19 = arith.constant 19 : index
    %c0_140 = arith.constant 0 : index
    %313 = vector.load %arg3[%c19, %c0_140] : memref<20x128xf32, #tpu.memory_space<vmem>>, vector<1x128xf32>
    %314 = vector.broadcast %313 : vector<1x128xf32> to vector<16x128xf32>
    %315 = arith.addf %312, %314 : vector<16x128xf32>
    %c0_141 = arith.constant 0 : index
    %c0_142 = arith.constant 0 : index
    %316 = vector.load %arg11[%c0_141, %c0_142] : memref<16x128xf32, #tpu.memory_space<vmem>>, vector<16x128xf32>
    tpu.vector_store %arg11[%c0_141, %c0_142], %315 {strides = array<i32>} : memref<16x128xf32, #tpu.memory_space<vmem>>, vector<16x128xf32>,
    return
  }
}

</mosaic_0001>

<bundles_post_ra>
// kernel: tpu_custom_call.1
= control target key start
LH: loop header
LB: loop body
LE: loop exit
PB: predicated region body
PF: predicated region fallthrough
CT: control target
= control target key end

     0   :  { %16 = vsyncpa [#allocation3], 0  ;;  %s2476_s0 = inlined_call_operand.vmem [shape: s32[16,1], index: 0, kind: input, shape index: {}]   ;;  %s2477_s1 = inlined_call_operand.vmem [shape: s32[2,8], index: 1, kind: input, shape index: {}]   ;;  %s2478_s2 = inlined_call_operand.vmem [shape: bf16[128,32], index: 2, kind: input, shape index: {}]   ;;  %s2479_s3 = inlined_call_operand.vmem [shape: f32[20,128], index: 3, kind: input, shape index: {}]   ;;  %s2480_s4 = inlined_call_operand.vmem [shape: bf16[2,32,96], index: 4, kind: input, shape index: {}]   ;;  %s2481_s5 = inlined_call_operand.vmem [shape: bf16[2,32,32], index: 5, kind: input, shape index: {}]   ;;  %s2482_s6 = inlined_call_operand.vmem [shape: bf16[2,32,64], index: 6, kind: input, shape index: {}]   ;;  %s2483_s7 = inlined_call_operand.vmem [shape: bf16[2,64,32], index: 7, kind: input, shape index: {}]   ;;  %s2484_s8 = inlined_call_operand.vmem [shape: f32[2,8,128], index: 8, kind: input, shape index: {}]   ;;  %s2485_s9 = inlined_call_operand.hbm [shape: bf16[32,32], index: 9, kind: input, shape index: {}]   ;;  %s2486_s10 = inlined_call_operand.hbm [shape: bf16[32,128], index: 10, kind: input, shape index: {}]   ;;  %s2487_s11 = inlined_call_operand.hbm [shape: f32[16,128], index: 11, kind: output, shape index: {}]  }
   0x1   :  { %17 = vsyncpa [#allocation6], 0 }
   0x2   :  { %18 = vsyncpa [#allocation4], 0  ;;  %s41_s19 = sshll.u32 %s2485_s9, 4  ;;  %s2017_s20 = smov [#allocation2]   ;;  %s42_s19 = int_to_ptr.hbm [resolvable:$true] %s41_s19 }
   0x3   :  { %s43_s21 = sshll.u32 %s2017_s20, 4  ;;  %s54_s24 = sshll.u32 %s2486_s10, 4  ;;  %s44_s21 = int_to_ptr.vmem [resolvable:$true] %s43_s21  ;;  %s55_s24 = int_to_ptr.hbm [resolvable:$true] %s54_s24 }
   0x4   :  { %s2018_s25 = smov 64   ;;  %s2019_s26 = smov 4  }
   0x5   :  { %49 = dma.hbm_to_vmem [thread:$0]  %s42_s19, 256, %s44_s21, [#allocation3], %s2018_s25, %s2018_s25, %s2019_s26  }
   0x6   :  { %s2020_s27 = smov [#allocation5]  }
   0x7   :  { %s56_s28 = sshll.u32 %s2020_s27, 4  ;;  %s57_s28 = int_to_ptr.vmem [resolvable:$true] %s56_s28 }
   0x8   :  { %62 = dma.hbm_to_vmem [thread:$0]  %s55_s24, 256, %s57_s28, [#allocation6], %s2018_s25, %s2018_s25, %s2019_s26  }
   0x9   :  { %2011 = dma.done.wait [#allocation3], 256  }
   0xa   :  { %2012 = vsyncadd [#allocation3], 4294967040 }
   0xb   :  { %2013 = dma.done.wait [#allocation6], 256  }
   0xc   :  { %2014 = vsyncadd [#allocation6], 4294967040  ;;  %v2021_v0 = vmov 0   ;;  %v72_v1 = vld [vmem:[%s2476_s0] sm:$0xff]  ;;  %v1792_v2 = vld [vmem:[%s2478_s2 + $0x38] sm:$0xff]  ;;  %v74_v12 = vlaneseq  ;;  %vm169_vm3 = vcmask 261120  }
   0xd   :  { %1832 = vset.pattern.permute.xlu0 %v2021_v0  ;;  %153 = vmatpush.bf16.msra.mxu0 %v1792_v2  ;;  %v1791_v3 = vld [vmem:[%s2478_s2 + $0x30] sm:$0xff]  ;;  %v73_v4 = vld [vmem:[%s2476_s0 + $0x8] sm:$0xff]  ;;  %v1789_v6 = vld [vmem:[%s2478_s2 + $0x20] sm:$0xff]  ;;  %v2022_v15 = vmov 1.0|1.0   ;;  %v2023_v24 = vmov 32.0  }
   0xe   :  { %77 = vperm.xlu0 %1832, %v72_v1   ;;  %v1790_v5 = vld [vmem:[%s2478_s2 + $0x28] sm:$0xff]  ;;  %v1788_v7 = vld [vmem:[%s2478_s2 + $0x18] sm:$0xff]  ;;  %v1787_v8 = vld [vmem:[%s2478_s2 + $0x10] sm:$0xff]  ;;  %v75_v13 = vand.u32 127, %v74_v12  ;;  %1873 = vrcp.f32 %v2023_v24  ;;  %s2024_s20 = smov 96   ;;  %s2025_s21 = smov 80  }
   0xf   :  { %v1786_v9 = vld [vmem:[%s2478_s2 + $0x8] sm:$0xff]  ;;  %v1785_v10 = vld [vmem:[%s2478_s2] sm:$0xff]  ;;  %v1853_v62 = vld [vmem:[%s2479_s3 + $0x10] ss:$0 sm:$0xff]  ;;  %s2026_s22 = smov 112   ;;  %vm283_vm11 = vcmask 130048  }
  0x10   :  { %v103_v16 = vld [vmem:[%s2479_s3] sm:$0xff]  ;;  %v104_v20 = vld [vmem:[%s2479_s3 + $0x8] sm:$0xff]  ;;  %vm335_vm12 = vcmask 64512   ;;  %s2028_s27 = smov 16   ;;  %s2029_s0 = smov [#allocation7]  }
  0x11   :  { %154 = vmatpush.bf16.msra.mxu0 %v1791_v3  ;;  %v1794_v41 = vld [vmem:[%s2480_s4 + $0x8] sm:$0xff]  ;;  %v1793_v43 = vld [vmem:[%s2480_s4] sm:$0xff]  ;;  %v1854_v3 = vld [vmem:[%s2479_s3 + $0x11] ss:$0 sm:$0xff]  ;;  %s1575_s26 = sshll.u32 %s2487_s11, 4  ;;  %s2031_s28 = smov 8   ;;  %s1576_s26 = int_to_ptr.hbm [resolvable:$true] %s1575_s26 }
  0x12   :  { %272 = vmatpush.bf16.msra.mxu1 %v1794_v41 }
  0x14   :  { %v1874_v25 = vpop.eup %1873 }
  0x15   :  { %155 = vmatpush.bf16.msra.mxu0 %v1790_v5  ;;  %v177_v26 = vmul.f32 32.0, %v1874_v25  ;;  %vm181_vm4 = vweird.f32 %v1874_v25 }
  0x16   :  { %80 = vperm.xlu0 %1832, %v73_v4   ;;  %273 = vmatpush.bf16.msra.mxu1 %v1793_v43 }
  0x17   :  { %v178_v27 = vsub.f32 1.0, %v177_v26 }
  0x19   :  { %156 = vmatpush.bf16.msra.mxu0 %v1789_v6  ;;  %v179_v28 = vmul.f32 %v1874_v25, %v178_v27 }
  0x1b   :  { %v180_v29 = vadd.f32 %v1874_v25, %v179_v28 }
  0x1d   :  { %157 = vmatpush.bf16.msra.mxu0 %v1788_v7  ;;  %v2140_v30 = vsel %vm181_vm4, %v1874_v25, %v180_v29 }
  0x21   :  { %158 = vmatpush.bf16.msra.mxu0 %v1787_v8  ;;  %v1855_v8 = vld [vmem:[%s2484_s8] ss:$0 sm:$0xff] }
  0x25   :  { %159 = vmatpush.bf16.msra.mxu0 %v1786_v9 }
  0x29   :  { %160 = vmatpush.bf16.msra.mxu0 %v1785_v10 }
  0x80   :  { %v78_v11 = vpop.permute.xlu0 %77 }
  0x81   :  { %vm82_vm0 = vcmp.eq.s32.totalorder %v78_v11, %v75_v13 }
  0x88   :  { %v81_v14 = vpop.permute.xlu0 %80 }
  0x89   :  { %vm83_vm1 = vcmp.eq.s32.totalorder %v81_v14, %v75_v13 }
  0x8a   :  { %vm1621_vm2 = vmpackc.low %vm83_vm1, %vm82_vm0 }
  0x8b   :  { %1622 = vmatmul.msk.bf16.vlgmr.msra.gmra.mxu0 %vm1621_vm2, %v2022_v15 }
 0x108   :  { %v162_v17 = vpop.f32.mrf.mxu0 }
 0x109   :  { %v163_v18 = vadd.f32 %v162_v17, %v103_v16  ;;  %v227_v16 = vld [vmem:[%s2477_s1] sm:$0x3]  ;;  %s2027_s1 = smov 48  }
 0x10a   :  { %v228_v17 = vcvt.s32.f32 %v227_v16 }
 0x10b   :  { %v170_v19 = vsel %vm169_vm3, %v163_v18, 0.0 }
 0x10c   :  { %171 = vadd.xlane.f32.xlu1 %v170_v19 }
 0x110   :  { %v164_v21 = vpop.f32.mrf.mxu0 }
 0x111   :  { %v165_v22 = vadd.f32 %v164_v21, %v104_v20 }
 0x113   :  { %v173_v23 = vsel %vm169_vm3, %v165_v22, 0.0 }
 0x114   :  { %174 = vadd.xlane.f32.xlu1 %v173_v23 }
 0x17f   :  { %v172_v31 = vpop.xlane.xlu1 %171 }
 0x180   :  { %v183_v32 = vmul.f32 %v2140_v30, %v172_v31 }
 0x182   :  { %v185_v33 = vsub.f32 %v163_v18, %v183_v32  ;;  %v229_v18 = vsub.f32 1.0, %v228_v17 }
 0x184   :  { %v187_v34 = vmul.f32 %v185_v33, %v185_v33  ;;  %v230_v19 = vmul.f32 -1e+09, %v229_v18 }
 0x186   :  { %v189_v35 = vsel %vm169_vm3, %v187_v34, 0.0  ;;  %v2195_v20 = vperm.slane %v230_v19, 0  ;;  %v232_v23 = vrot.slane %v230_v19, 1  ;;  %v1795_v19 = vld [vmem:[%s2481_s5] sm:$0xff] }
 0x187   :  { %190 = vadd.xlane.f32.xlu2 %v189_v35  ;;  %v175_v36 = vpop.xlane.xlu1 %174 }
 0x188   :  { %v184_v37 = vmul.f32 %v2140_v30, %v175_v36  ;;  %v2199_v25 = vperm.slane %v232_v23, 0 }
 0x18a   :  { %v186_v38 = vsub.f32 %v165_v22, %v184_v37 }
 0x18c   :  { %v188_v39 = vmul.f32 %v186_v38, %v186_v38 }
 0x18e   :  { %v192_v40 = vsel %vm169_vm3, %v188_v39, 0.0 }
 0x18f   :  { %193 = vadd.xlane.f32.xlu2 %v192_v40 }
 0x1fa   :  { %v191_v42 = vpop.xlane.xlu2 %190 }
 0x1fb   :  { %v195_v44 = vmul.f32 %v191_v42, %v2140_v30 }
 0x1fd   :  { %v197_v45 = vadd.f32 1e-12, %v195_v44 }
 0x1ff   :  { %1875 = vrsqrt.f32 %v197_v45  ;;  %vm205_vm6 = vweird.f32 %v197_v45 }
 0x202   :  { %v194_v46 = vpop.xlane.xlu2 %193 }
 0x203   :  { %v196_v47 = vmul.f32 %v194_v46, %v2140_v30 }
 0x205   :  { %v1876_v48 = vpop.eup %1875  ;;  %v198_v49 = vadd.f32 1e-12, %v196_v47 }
 0x206   :  { %v200_v50 = vmul.f32 %v1876_v48, %v197_v45  ;;  %vm206_vm5 = vweird.f32 %v1876_v48 }
 0x207   :  { %1877 = vrsqrt.f32 %v198_v49  ;;  %vm207_vm7 = vmor %vm205_vm6, %vm206_vm5  ;;  %vm215_vm9 = vweird.f32 %v198_v49 }
 0x208   :  { %v201_v51 = vmul.f32 %v1876_v48, %v200_v50 }
 0x20a   :  { %v202_v52 = vmul.f32 0.5, %v201_v51 }
 0x20c   :  { %v203_v53 = vsub.f32 1.5, %v202_v52 }
 0x20d   :  { %v1878_v54 = vpop.eup %1877 }
 0x20e   :  { %v204_v55 = vmul.f32 %v1876_v48, %v203_v53  ;;  %v210_v56 = vmul.f32 %v1878_v54, %v198_v49  ;;  %vm216_vm8 = vweird.f32 %v1878_v54 }
 0x20f   :  { %vm217_vm10 = vmor %vm215_vm9, %vm216_vm8 }
 0x210   :  { %v211_v57 = vmul.f32 %v1878_v54, %v210_v56  ;;  %v208_v58 = vsel %vm207_vm7, %v1876_v48, %v204_v55 }
 0x211   :  { %v219_v61 = vmul.f32 %v208_v58, %v185_v33 }
 0x212   :  { %v212_v59 = vmul.f32 0.5, %v211_v57 }
 0x213   :  { %v222_v2 = vmul.f32 %v1853_v62, %v219_v61 }
 0x214   :  { %v213_v60 = vsub.f32 1.5, %v212_v59 }
 0x215   :  { %v2160_v5 = vadd.f32 %v1854_v3, %v222_v2 }
 0x216   :  { %v214_v63 = vmul.f32 %v1878_v54, %v213_v60 }
 0x218   :  { %v218_v0 = vsel %vm217_vm10, %v1878_v54, %v214_v63 }
 0x219   :  { %v220_v1 = vmul.f32 %v218_v0, %v186_v38 }
 0x21b   :  { %v223_v4 = vmul.f32 %v1853_v62, %v220_v1 }
 0x21d   :  { %v2162_v6 = vadd.f32 %v1854_v3, %v223_v4 }
 0x21f   :  { %v245_v7 = vpack.c.bf16 %v2162_v6, %v2160_v5 }
 0x221   :  { %1631 = vmatmul.msk.bf16.vlgmr.msra.gmra.mxu1 %vm169_vm3, %v245_v7 }
 0x29e   :  { %v275_v9 = vpop.f32.mrf.mxu1 }
 0x29f   :  { %v2170_v10 = vadd.f32 %v1855_v8, %v275_v9 }
 0x2a1   :  { %281 = vrot.lane.b32.xlu0 %v2170_v10, %s2024_s20 }
 0x2a6   :  { %v277_v11 = vpop.f32.mrf.mxu1 }
 0x2a7   :  { %v2174_v12 = vadd.f32 %v1855_v8, %v277_v11 }
 0x2a9   :  { %309 = vrot.lane.b32.xlu1 %v2174_v12, %s2024_s20 }
 0x2b1   :  { %358 = vrot.lane.b32.xlu1 %v2170_v10, %s2018_s25 }
 0x2b9   :  { %440 = vrot.lane.b32.xlu1 %v2174_v12, %s2025_s21 }
 0x2c1   :  { %438 = vrot.lane.b32.xlu1 %v2174_v12, %s2026_s22 }
 0x2c9   :  { %410 = vrot.lane.b32.xlu1 %v2170_v10, %s2026_s22 }
 0x313   :  { %v282_v13 = vpop.permute.xlu0 %281 }
 0x314   :  { %1632 = vmatpush.xpose.msk.msra.mxu3 %vm283_vm11, %v282_v13 }
 0x317   :  { %1633 = vmatmul.msk.f32.vlgmr.msra.gmra.mxu3 %vm283_vm11, %v2170_v10 }
 0x31b   :  { %v310_v14 = vpop.permute.xlu1 %309 }
 0x31c   :  { %1634 = vmatpush.xpose.msk.msrb.mxu3 %vm283_vm11, %v310_v14 }
 0x31f   :  { %1635 = vmatmul.msk.f32.vlgmr.msrb.gmra.mxu3 %vm283_vm11, %v2174_v12 }
 0x323   :  { %v359_v15 = vpop.permute.xlu1 %358 }
 0x324   :  { %379 = vmatpush.msra.mxu2 %v359_v15 }
 0x32b   :  { %v441_v39 = vpop.permute.xlu1 %440 }
 0x333   :  { %v439_v46 = vpop.permute.xlu1 %438 }
 0x33b   :  { %v411_v50 = vpop.permute.xlu1 %410 }
 0x39a   :  { %v305_v21 = vpop.f32.mrf.mxu3 }
 0x39b   :  { %v306_v22 = vadd.f32 %v305_v21, %v2195_v20 }
 0x39d   :  { %v336_v24 = vsel %vm335_vm12, %v306_v22, -inf }
 0x39e   :  { %337 = vmax.xlane.f32.xlu0 %v336_v24 }
 0x3a2   :  { %v332_v26 = vpop.f32.mrf.mxu3 }
 0x3a3   :  { %v333_v27 = vadd.f32 %v332_v26, %v2199_v25 }
 0x3a5   :  { %v339_v28 = vsel %vm335_vm12, %v333_v27, -inf }
 0x3a6   :  { %340 = vmax.xlane.f32.xlu2 %v339_v28  ;;  %v1856_v28 = vld [vmem:[%s2484_s8 + $0x2] ss:$0 sm:$0xff] }
 0x3be   :  { %384 = vrot.lane.b32.xlu2 %v2174_v12, %s2018_s25 }
 0x411   :  { %v338_v29 = vpop.xlane.xlu0 %337 }
 0x412   :  { %v342_v31 = vsub.f32 %v306_v22, %v338_v29 }
 0x414   :  { %v344_v32 = vmul.f32 1.442695, %v342_v31 }
 0x416   :  { %1879 = vpow2.f32 %v344_v32 }
 0x419   :  { %v341_v33 = vpop.xlane.xlu2 %340 }
 0x41a   :  { %v343_v34 = vsub.f32 %v333_v27, %v341_v33 }
 0x41c   :  { %v1880_v35 = vpop.eup %1879  ;;  %v346_v36 = vmul.f32 1.442695, %v343_v34 }
 0x41d   :  { %v348_v37 = vsel %vm335_vm12, %v1880_v35, 0.0 }
 0x41e   :  { %1881 = vpow2.f32 %v346_v36  ;;  %349 = vadd.xlane.f32.xlu2 %v348_v37 }
 0x421   :  { %v385_v38 = vpop.permute.xlu2 %384 }
 0x422   :  { %405 = vmatpush.msra.mxu3 %v385_v38 }
 0x424   :  { %1640 = vmatpush.xpose.msk.msrb.mxu3 %vm283_vm11, %v441_v39  ;;  %v1882_v40 = vpop.eup %1881 }
 0x425   :  { %v351_v41 = vsel %vm335_vm12, %v1882_v40, 0.0 }
 0x426   :  { %352 = vadd.xlane.f32.xlu2 %v351_v41 }
 0x43e   :  { %412 = vrot.lane.b32.xlu2 %v2170_v10, %s2025_s21 }
 0x491   :  { %v350_v42 = vpop.xlane.xlu2 %349 }
 0x492   :  { %1883 = vrcp.f32 %v350_v42 }
 0x498   :  { %v1884_v43 = vpop.eup %1883 }
 0x499   :  { %v353_v44 = vpop.xlane.xlu2 %352  ;;  %v356_v45 = vmul.f32 %v1884_v43, %v1880_v35 }
 0x49a   :  { %1885 = vrcp.f32 %v353_v44 }
 0x49b   :  { %1636 = vmatmul.msk.f32.vlgmr.msra.gmra.mxu2 %vm335_vm12, %v356_v45 }
 0x4a0   :  { %v1886_v47 = vpop.eup %1885 }
 0x4a1   :  { %v357_v48 = vmul.f32 %v1886_v47, %v1882_v40  ;;  %v413_v49 = vpop.permute.xlu2 %412 }
 0x4a2   :  { %1638 = vmatpush.xpose.msk.msrb.mxu2 %vm283_vm11, %v413_v49  ;;  %v1797_v49 = vld [vmem:[%s2482_s6] sm:$0xff] }
 0x4a3   :  { %1637 = vmatmul.msk.f32.vlgmr.msra.gmra.mxu3 %vm335_vm12, %v357_v48 }
 0x4a5   :  { %1639 = vmatmul.msk.f32.vlgmr.msrb.gmra.mxu2 %vm283_vm11, %v411_v50 }
 0x4ab   :  { %1641 = vmatmul.msk.f32.vlgmr.msrb.gmra.mxu3 %vm283_vm11, %v439_v46 }
 0x51e   :  { %v381_v51 = vpop.f32.mrf.mxu2 }
 0x526   :  { %v407_v52 = vpop.f32.mrf.mxu3 }
 0x528   :  { %v435_v53 = vpop.f32.mrf.mxu2 }
 0x529   :  { %v436_v54 = vadd.f32 %v435_v53, %v2195_v20 }
 0x52b   :  { %v466_v55 = vsel %vm335_vm12, %v436_v54, -inf }
 0x52c   :  { %467 = vmax.xlane.f32.xlu2 %v466_v55 }
 0x52e   :  { %v463_v56 = vpop.f32.mrf.mxu3 }
 0x52f   :  { %v464_v57 = vadd.f32 %v463_v56, %v2199_v25 }
 0x531   :  { %v469_v58 = vsel %vm335_vm12, %v464_v57, -inf }
 0x532   :  { %470 = vmax.xlane.f32.xlu0 %v469_v58 }
 0x59f   :  { %v468_v59 = vpop.xlane.xlu2 %467 }
 0x5a0   :  { %v472_v60 = vsub.f32 %v436_v54, %v468_v59 }
 0x5a2   :  { %v474_v61 = vmul.f32 1.442695, %v472_v60 }
 0x5a4   :  { %1887 = vpow2.f32 %v474_v61 }
 0x5a5   :  { %v471_v62 = vpop.xlane.xlu0 %470 }
 0x5a6   :  { %v473_v63 = vsub.f32 %v464_v57, %v471_v62 }
 0x5a8   :  { %v476_v0 = vmul.f32 1.442695, %v473_v63 }
 0x5aa   :  { %v1888_v1 = vpop.eup %1887  ;;  %1889 = vpow2.f32 %v476_v0 }
 0x5ab   :  { %v478_v2 = vsel %vm335_vm12, %v1888_v1, 0.0 }
 0x5ac   :  { %479 = vadd.xlane.f32.xlu0 %v478_v2  ;;  %v1857_v2 = vld [vmem:[%s2484_s8 + $0x3] ss:$0 sm:$0xff] }
 0x5b0   :  { %v1890_v3 = vpop.eup %1889 }
 0x5b1   :  { %v481_v4 = vsel %vm335_vm12, %v1890_v3, 0.0 }
 0x5b2   :  { %482 = vadd.xlane.f32.xlu1 %v481_v4 }
 0x5c0   :  { %514 = vrot.lane.b32.xlu0 %v2174_v12, %s2027_s1 }
 0x5c8   :  { %488 = vrot.lane.b32.xlu0 %v2170_v10, %s2027_s1  ;;  %v1796_v10 = vld [vmem:[%s2481_s5 + $0x8] sm:$0xff] }
 0x5c9   :  { %577 = vmatpush.bf16.msra.mxu3 %v1796_v10  ;;  %v1859_v10 = vld [vmem:[%s2484_s8 + $0x1] ss:$0 sm:$0xff] }
 0x5cd   :  { %578 = vmatpush.bf16.msra.mxu3 %v1795_v19 }
 0x61f   :  { %v480_v8 = vpop.xlane.xlu0 %479 }
 0x625   :  { %v483_v7 = vpop.xlane.xlu1 %482 }
 0x626   :  { %1891 = vrcp.f32 %v483_v7 }
 0x627   :  { %1893 = vrcp.f32 %v480_v8  ;;  %v1858_v8 = vld [vmem:[%s2484_s8 + $0x4] ss:$0 sm:$0xff] }
 0x62c   :  { %v1892_v9 = vpop.eup %1891 }
 0x62d   :  { %v487_v11 = vmul.f32 %v1892_v9, %v1890_v3  ;;  %v1894_v14 = vpop.eup %1893 }
 0x62e   :  { %v486_v16 = vmul.f32 %v1894_v14, %v1888_v1 }
 0x632   :  { %v515_v13 = vpop.permute.xlu0 %514 }
 0x633   :  { %535 = vmatpush.msra.mxu2 %v515_v13 }
 0x634   :  { %1643 = vmatmul.msk.f32.vlgmr.msra.gmra.mxu2 %vm335_vm12, %v487_v11 }
 0x63a   :  { %v489_v15 = vpop.permute.xlu0 %488 }
 0x63b   :  { %509 = vmatpush.msrb.mxu1 %v489_v15 }
 0x63c   :  { %1642 = vmatmul.msk.f32.vlgmr.msrb.gmra.mxu1 %vm335_vm12, %v486_v16 }
 0x6b7   :  { %v537_v12 = vpop.f32.mrf.mxu2 }
 0x6b9   :  { %v511_v17 = vpop.f32.mrf.mxu1 }
 0x6ba   :  { %v1833_v18 = vpack.i.bf16 %v537_v12, %v511_v17 }
 0x6bc   :  { %1834 = vrot.lane.b32.xlu0 %v1833_v18, %s2028_s27 }
 0x72e   :  { %v1835_v21 = vpop.permute.xlu0 %1834 }
 0x72f   :  { %v1837_v22 = vunpack.i.h.bf16 %v1835_v21  ;;  %v1836_v23 = vunpack.i.l.bf16 %v1835_v21 }
 0x731   :  { %v549_v24 = vsel %vm283_vm11, %v407_v52, %v1837_v22  ;;  %v548_v26 = vsel %vm283_vm11, %v381_v51, %v1836_v23 }
 0x732   :  { %v550_v27 = vpack.c.bf16 %v549_v24, %v548_v26 }
 0x734   :  { %1652 = vmatmul.msk.bf16.vlgmr.msra.gmra.mxu3 %vm169_vm3, %v550_v27 }
 0x7b7   :  { %v580_v29 = vpop.f32.mrf.mxu3 }
 0x7b8   :  { %v581_v31 = vadd.f32 %v1856_v28, %v580_v29 }
 0x7ba   :  { %v585_v32 = vadd.f32 %v581_v31, %v2160_v5 }
 0x7bc   :  { %v587_v33 = vsel %vm169_vm3, %v585_v32, 0.0 }
 0x7bd   :  { %588 = vadd.xlane.f32.xlu2 %v587_v33 }
 0x7bf   :  { %v582_v34 = vpop.f32.mrf.mxu3 }
 0x7c0   :  { %v583_v35 = vadd.f32 %v1856_v28, %v582_v34 }
 0x7c2   :  { %v586_v36 = vadd.f32 %v583_v35, %v2162_v6  ;;  %v1798_v6 = vld [vmem:[%s2482_s6 + $0x8] sm:$0xff] }
 0x7c3   :  { %664 = vmatpush.bf16.msra.mxu1 %v1798_v6 }
 0x7c4   :  { %v590_v37 = vsel %vm169_vm3, %v586_v36, 0.0 }
 0x7c5   :  { %591 = vadd.xlane.f32.xlu1 %v590_v37  ;;  %v1802_v37 = vld [vmem:[%s2483_s7 + $0x18] sm:$0xff] }
 0x7c6   :  { %802 = vmatpush.bf16.msrb.mxu2 %v1802_v37 }
 0x7c7   :  { %665 = vmatpush.bf16.msra.mxu1 %v1797_v49 }
 0x830   :  { %v589_v38 = vpop.xlane.xlu2 %588 }
 0x831   :  { %v593_v39 = vmul.f32 %v589_v38, %v2140_v30 }
 0x833   :  { %v595_v40 = vsub.f32 %v585_v32, %v593_v39 }
 0x835   :  { %v597_v41 = vmul.f32 %v595_v40, %v595_v40 }
 0x837   :  { %v599_v42 = vsel %vm169_vm3, %v597_v41, 0.0 }
 0x838   :  { %v592_v43 = vpop.xlane.xlu1 %591  ;;  %600 = vadd.xlane.f32.xlu0 %v599_v42 }
 0x839   :  { %v594_v5 = vmul.f32 %v592_v43, %v2140_v30 }
 0x83b   :  { %v596_v44 = vsub.f32 %v586_v36, %v594_v5 }
 0x83d   :  { %v598_v45 = vmul.f32 %v596_v44, %v596_v44 }
 0x83f   :  { %v602_v46 = vsel %vm169_vm3, %v598_v45, 0.0 }
 0x840   :  { %603 = vadd.xlane.f32.xlu2 %v602_v46 }
 0x8ab   :  { %v601_v47 = vpop.xlane.xlu0 %600 }
 0x8ac   :  { %v605_v48 = vmul.f32 %v601_v47, %v2140_v30 }
 0x8ae   :  { %v607_v50 = vadd.f32 1e-12, %v605_v48 }
 0x8b0   :  { %1895 = vrsqrt.f32 %v607_v50  ;;  %vm615_vm14 = vweird.f32 %v607_v50 }
 0x8b3   :  { %v604_v51 = vpop.xlane.xlu2 %603 }
 0x8b4   :  { %v606_v52 = vmul.f32 %v604_v51, %v2140_v30  ;;  %v1800_v51 = vld [vmem:[%s2483_s7 + $0x8] sm:$0xff] }
 0x8b6   :  { %v1896_v53 = vpop.eup %1895  ;;  %v608_v54 = vadd.f32 1e-12, %v606_v52 }
 0x8b7   :  { %v610_v55 = vmul.f32 %v1896_v53, %v607_v50  ;;  %vm616_vm13 = vweird.f32 %v1896_v53 }
 0x8b8   :  { %1897 = vrsqrt.f32 %v608_v54  ;;  %vm617_vm15 = vmor %vm615_vm14, %vm616_vm13  ;;  %vm625_vm1 = vweird.f32 %v608_v54  ;;  %vm794_vm14 = vcmask 523264  }
 0x8b9   :  { %v611_v56 = vmul.f32 %v1896_v53, %v610_v55 }
 0x8bb   :  { %v612_v57 = vmul.f32 0.5, %v611_v56 }
 0x8bd   :  { %v613_v58 = vsub.f32 1.5, %v612_v57  ;;  %v1799_v57 = vld [vmem:[%s2483_s7] sm:$0xff] }
 0x8be   :  { %v1898_v59 = vpop.eup %1897 }
 0x8bf   :  { %v614_v60 = vmul.f32 %v1896_v53, %v613_v58  ;;  %v620_v61 = vmul.f32 %v1898_v59, %v608_v54  ;;  %vm626_vm0 = vweird.f32 %v1898_v59 }
 0x8c0   :  { %vm627_vm2 = vmor %vm625_vm1, %vm626_vm0 }
 0x8c1   :  { %v621_v62 = vmul.f32 %v1898_v59, %v620_v61  ;;  %v618_v63 = vsel %vm617_vm15, %v1896_v53, %v614_v60 }
 0x8c2   :  { %v629_v3 = vmul.f32 %v618_v63, %v595_v40 }
 0x8c3   :  { %v622_v0 = vmul.f32 0.5, %v621_v62 }
 0x8c4   :  { %v632_v9 = vmul.f32 %v1857_v2, %v629_v3 }
 0x8c5   :  { %v623_v1 = vsub.f32 1.5, %v622_v0 }
 0x8c6   :  { %v2262_v14 = vadd.f32 %v1858_v8, %v632_v9 }
 0x8c7   :  { %v624_v4 = vmul.f32 %v1898_v59, %v623_v1 }
 0x8c9   :  { %v628_v7 = vsel %vm627_vm2, %v1898_v59, %v624_v4 }
 0x8ca   :  { %v630_v11 = vmul.f32 %v628_v7, %v596_v44  ;;  %v1801_v44 = vld [vmem:[%s2483_s7 + $0x10] sm:$0xff] }
 0x8cb   :  { %803 = vmatpush.bf16.msrb.mxu2 %v1801_v44 }
 0x8cc   :  { %v633_v13 = vmul.f32 %v1857_v2, %v630_v11 }
 0x8ce   :  { %v2264_v15 = vadd.f32 %v1858_v8, %v633_v13 }
 0x8cf   :  { %804 = vmatpush.bf16.msrb.mxu2 %v1800_v51 }
 0x8d0   :  { %v637_v16 = vpack.c.bf16 %v2264_v15, %v2262_v14 }
 0x8d2   :  { %1661 = vmatmul.msk.bf16.vlgmr.msra.gmra.mxu1 %vm169_vm3, %v637_v16 }
 0x8d3   :  { %805 = vmatpush.bf16.msrb.mxu2 %v1799_v57 }
 0x94f   :  { %v667_v12 = vpop.f32.mrf.mxu1 }
 0x950   :  { %v2272_v17 = vadd.f32 %v1859_v10, %v667_v12 }
 0x952   :  { %v2275_v18 = vmul.f32 0.70710677, %v2272_v17 }
 0x954   :  { %v676_v19 = vmul.f32 %v2275_v18, %v2275_v18 }
 0x956   :  { %v677_v21 = vmin.f32 %v676_v19, 16.0 }
 0x957   :  { %v669_v22 = vpop.f32.mrf.mxu1 }
 0x958   :  { %v678_v23 = vmul.f32 2.1237322e-06, %v677_v21  ;;  %v689_v24 = vmul.f32 3.8918573e-05, %v677_v21  ;;  %v2279_v26 = vadd.f32 %v1859_v10, %v669_v22 }
 0x95a   :  { %v679_v27 = vadd.f32 0.00028619796, %v678_v23  ;;  %v690_v28 = vadd.f32 0.001143296, %v689_v24  ;;  %v2282_v29 = vmul.f32 0.70710677, %v2279_v26 }
 0x95b   :  { %v673_v44 = vmul.f32 0.5, %v2279_v26 }
 0x95c   :  { %v691_v31 = vmul.f32 %v690_v28, %v677_v21  ;;  %v716_v32 = vmul.f32 %v2282_v29, %v2282_v29  ;;  %v680_v33 = vmul.f32 %v679_v27, %v677_v21 }
 0x95e   :  { %v692_v34 = vadd.f32 0.014752088, %v691_v31  ;;  %v717_v35 = vmin.f32 %v716_v32, 16.0  ;;  %v681_v40 = vadd.f32 0.0036580483, %v680_v33 }
 0x960   :  { %v693_v36 = vmul.f32 %v692_v34, %v677_v21  ;;  %v718_v38 = vmul.f32 2.1237322e-06, %v717_v35  ;;  %v729_v39 = vmul.f32 3.8918573e-05, %v717_v35  ;;  %v682_v6 = vmul.f32 %v681_v40, %v677_v21 }
 0x962   :  { %v694_v41 = vadd.f32 0.112945676, %v693_v36  ;;  %v719_v42 = vadd.f32 0.00028619796, %v718_v38  ;;  %v730_v43 = vadd.f32 0.001143296, %v729_v39 }
 0x963   :  { %v683_v53 = vadd.f32 0.05243302, %v682_v6 }
 0x964   :  { %v695_v5 = vmul.f32 %v694_v41, %v677_v21  ;;  %v720_v45 = vmul.f32 %v719_v42, %v717_v35  ;;  %v731_v46 = vmul.f32 %v730_v43, %v717_v35 }
 0x965   :  { %v684_v59 = vmul.f32 %v683_v53, %v677_v21 }
 0x966   :  { %v696_v47 = vadd.f32 0.4994258, %v695_v5  ;;  %v721_v48 = vadd.f32 0.0036580483, %v720_v45  ;;  %v732_v49 = vadd.f32 0.014752088, %v731_v46 }
 0x967   :  { %v685_v0 = vadd.f32 0.18741608, %v684_v59  ;;  %v672_v5 = vmul.f32 0.5, %v2272_v17 }
 0x968   :  { %v697_v50 = vmul.f32 %v696_v47, %v677_v21  ;;  %v733_v52 = vmul.f32 %v732_v49, %v717_v35  ;;  %v722_v55 = vmul.f32 %v721_v48, %v717_v35 }
 0x969   :  { %v686_v7 = vmul.f32 %v685_v0, %v677_v21 }
 0x96a   :  { %v698_v54 = vadd.f32 1.0, %v697_v50  ;;  %v734_v56 = vadd.f32 0.112945676, %v733_v52  ;;  %v723_v60 = vadd.f32 0.05243302, %v722_v55 }
 0x96b   :  { %v687_v10 = vadd.f32 1.1283791, %v686_v7 }
 0x96c   :  { %1899 = vrcp.f32 %v698_v54  ;;  %v735_v58 = vmul.f32 %v734_v56, %v717_v35  ;;  %v724_v2 = vmul.f32 %v723_v60, %v717_v35  ;;  %v710_v9 = vand.u32 2147483648, %v698_v54 }
 0x96d   :  { %v708_v13 = vand.u32 2147483647, %v698_v54  ;;  %vm704_vm5 = vweird.f32 %v698_v54  ;;  %v688_v28 = vmul.f32 %v687_v10, %v2275_v18 }
 0x96e   :  { %v736_v61 = vadd.f32 0.4994258, %v735_v58  ;;  %v725_v11 = vadd.f32 0.18741608, %v724_v2  ;;  %v711_v22 = vor.u32 1.1754944e-38, %v710_v9  ;;  %v1803_v2 = vld [vmem:[%s2480_s4 + $0x10] sm:$0xff] }
 0x96f   :  { %vm709_vm7 = vcmp.eq.f32.partialorder %v708_v13, 8.507059e+37 }
 0x970   :  { %v737_v62 = vmul.f32 %v736_v61, %v717_v35  ;;  %v726_v23 = vmul.f32 %v725_v11, %v717_v35 }
 0x972   :  { %v1900_v63 = vpop.eup %1899  ;;  %v738_v3 = vadd.f32 1.0, %v737_v62  ;;  %v727_v21 = vadd.f32 1.1283791, %v726_v23 }
 0x973   :  { %v700_v1 = vmul.f32 %v1900_v63, %v698_v54  ;;  %vm705_vm4 = vweird.f32 %v1900_v63 }
 0x974   :  { %1901 = vrcp.f32 %v738_v3  ;;  %vm706_vm6 = vmor %vm704_vm5, %vm705_vm4  ;;  %v750_v32 = vand.u32 2147483648, %v738_v3  ;;  %v748_v36 = vand.u32 2147483647, %v738_v3  ;;  %vm744_vm9 = vweird.f32 %v738_v3 }
 0x975   :  { %v701_v4 = vsub.f32 1.0, %v700_v1  ;;  %v728_v40 = vmul.f32 %v727_v21, %v2282_v29  ;;  %v1860_v29 = vld [vmem:[%s2484_s8 + $0x5] ss:$0 sm:$0xff] }
 0x976   :  { %v751_v38 = vor.u32 1.1754944e-38, %v750_v32  ;;  %vm749_vm13 = vcmp.eq.f32.partialorder %v748_v36, 8.507059e+37 }
 0x977   :  { %v702_v8 = vmul.f32 %v1900_v63, %v701_v4 }
 0x979   :  { %v703_v16 = vadd.f32 %v1900_v63, %v702_v8 }
 0x97a   :  { %v1902_v12 = vpop.eup %1901 }
 0x97b   :  { %v707_v19 = vsel %vm706_vm6, %v1900_v63, %v703_v16  ;;  %v740_v24 = vmul.f32 %v1902_v12, %v738_v3  ;;  %vm745_vm8 = vweird.f32 %v1902_v12 }
 0x97c   :  { %v712_v27 = vsel %vm709_vm7, %v711_v22, %v707_v19  ;;  %vm746_vm10 = vmor %vm744_vm9, %vm745_vm8 }
 0x97d   :  { %v741_v31 = vsub.f32 1.0, %v740_v24  ;;  %v713_v33 = vmul.f32 %v712_v27, %v688_v28  ;;  %v1861_v28 = vld [vmem:[%s2484_s8 + $0x6] ss:$0 sm:$0xff] }
 0x97f   :  { %v742_v34 = vmul.f32 %v1902_v12, %v741_v31  ;;  %v1662_v39 = vclamps-f32 %v713_v33, 1.0  ;;  %v1862_v33 = vld [vmem:[%s2484_s8 + $0x7] ss:$0 sm:$0xff] }
 0x981   :  { %v743_v37 = vadd.f32 %v1902_v12, %v742_v34  ;;  %v756_v43 = vadd.f32 1.0, %v1662_v39 }
 0x983   :  { %v747_v35 = vsel %vm746_vm10, %v1902_v12, %v743_v37  ;;  %v758_v46 = vmul.f32 %v756_v43, %v672_v5 }
 0x984   :  { %v752_v41 = vsel %vm749_vm13, %v751_v38, %v747_v35  ;;  %v1863_v35 = vld [vmem:[%s2484_s8 + $0x8] ss:$0 sm:$0xff] }
 0x985   :  { %v753_v42 = vmul.f32 %v752_v41, %v728_v40 }
 0x987   :  { %v1663_v18 = vclamps-f32 %v753_v42, 1.0 }
 0x989   :  { %v757_v45 = vadd.f32 1.0, %v1663_v18 }
 0x98b   :  { %v759_v6 = vmul.f32 %v757_v45, %v673_v44 }
 0x98d   :  { %v760_v47 = vpack.c.bf16 %v759_v6, %v758_v46 }
 0x98f   :  { %1680 = vmatmul.msk.bf16.vlgmr.msrb.gmra.mxu2 %vm794_vm14, %v760_v47 }
 0xa12   :  { %v807_v48 = vpop.f32.mrf.mxu2 }
 0xa13   :  { %v808_v49 = vadd.f32 %v1860_v29, %v807_v48 }
 0xa15   :  { %v812_v50 = vadd.f32 %v808_v49, %v2262_v14 }
 0xa17   :  { %v814_v51 = vsel %vm169_vm3, %v812_v50, 0.0 }
 0xa18   :  { %815 = vadd.xlane.f32.xlu1 %v814_v51 }
 0xa1a   :  { %v809_v17 = vpop.f32.mrf.mxu2 }
 0xa1b   :  { %v810_v26 = vadd.f32 %v1860_v29, %v809_v17 }
 0xa1d   :  { %v813_v52 = vadd.f32 %v810_v26, %v2264_v15  ;;  %v1804_v15 = vld [vmem:[%s2480_s4 + $0x18] sm:$0xff] }
 0xa1e   :  { %901 = vmatpush.bf16.msrb.mxu3 %v1804_v15 }
 0xa1f   :  { %v817_v53 = vsel %vm169_vm3, %v813_v52, 0.0 }
 0xa20   :  { %818 = vadd.xlane.f32.xlu2 %v817_v53 }
 0xa22   :  { %902 = vmatpush.bf16.msrb.mxu3 %v1803_v2 }
 0xa8b   :  { %v816_v54 = vpop.xlane.xlu1 %815 }
 0xa8c   :  { %v820_v55 = vmul.f32 %v816_v54, %v2140_v30 }
 0xa8e   :  { %v822_v56 = vsub.f32 %v812_v50, %v820_v55 }
 0xa90   :  { %v824_v57 = vmul.f32 %v822_v56, %v822_v56 }
 0xa92   :  { %v826_v58 = vsel %vm169_vm3, %v824_v57, 0.0 }
 0xa93   :  { %v819_v59 = vpop.xlane.xlu2 %818  ;;  %827 = vadd.xlane.f32.xlu1 %v826_v58 }
 0xa94   :  { %v821_v14 = vmul.f32 %v819_v59, %v2140_v30 }
 0xa96   :  { %v823_v60 = vsub.f32 %v813_v52, %v821_v14 }
 0xa98   :  { %v825_v61 = vmul.f32 %v823_v60, %v823_v60 }
 0xa9a   :  { %v829_v62 = vsel %vm169_vm3, %v825_v61, 0.0 }
 0xa9b   :  { %830 = vadd.xlane.f32.xlu2 %v829_v62 }
 0xb06   :  { %v828_v63 = vpop.xlane.xlu1 %827 }
 0xb07   :  { %v832_v0 = vmul.f32 %v828_v63, %v2140_v30 }
 0xb09   :  { %v834_v1 = vadd.f32 1e-12, %v832_v0 }
 0xb0b   :  { %1903 = vrsqrt.f32 %v834_v1  ;;  %vm842_vm0 = vweird.f32 %v834_v1 }
 0xb0e   :  { %v831_v3 = vpop.xlane.xlu2 %830 }
 0xb0f   :  { %v833_v4 = vmul.f32 %v831_v3, %v2140_v30 }
 0xb11   :  { %v1904_v7 = vpop.eup %1903  ;;  %v835_v8 = vadd.f32 1e-12, %v833_v4 }
 0xb12   :  { %v837_v9 = vmul.f32 %v1904_v7, %v834_v1  ;;  %vm843_vm15 = vweird.f32 %v1904_v7 }
 0xb13   :  { %1905 = vrsqrt.f32 %v835_v8  ;;  %vm844_vm1 = vmor %vm842_vm0, %vm843_vm15  ;;  %vm852_vm4 = vweird.f32 %v835_v8 }
 0xb14   :  { %v838_v11 = vmul.f32 %v1904_v7, %v837_v9 }
 0xb16   :  { %v839_v13 = vmul.f32 0.5, %v838_v11 }
 0xb18   :  { %v840_v16 = vsub.f32 1.5, %v839_v13 }
 0xb19   :  { %v1906_v10 = vpop.eup %1905 }
 0xb1a   :  { %v841_v12 = vmul.f32 %v1904_v7, %v840_v16  ;;  %v847_v19 = vmul.f32 %v1906_v10, %v835_v8  ;;  %vm853_vm2 = vweird.f32 %v1906_v10 }
 0xb1b   :  { %vm854_vm5 = vmor %vm852_vm4, %vm853_vm2 }
 0xb1c   :  { %v848_v22 = vmul.f32 %v1906_v10, %v847_v19  ;;  %v845_v23 = vsel %vm844_vm1, %v1904_v7, %v841_v12 }
 0xb1d   :  { %v856_v31 = vmul.f32 %v845_v23, %v822_v56 }
 0xb1e   :  { %v849_v24 = vmul.f32 0.5, %v848_v22 }
 0xb1f   :  { %v859_v34 = vmul.f32 %v1861_v28, %v856_v31 }
 0xb20   :  { %v850_v27 = vsub.f32 1.5, %v849_v24 }
 0xb21   :  { %v2328_v38 = vadd.f32 %v1862_v33, %v859_v34 }
 0xb22   :  { %v851_v21 = vmul.f32 %v1906_v10, %v850_v27 }
 0xb24   :  { %v855_v32 = vsel %vm854_vm5, %v1906_v10, %v851_v21 }
 0xb25   :  { %v857_v36 = vmul.f32 %v855_v32, %v823_v60 }
 0xb27   :  { %v860_v37 = vmul.f32 %v1861_v28, %v857_v36 }
 0xb29   :  { %v2330_v39 = vadd.f32 %v1862_v33, %v860_v37 }
 0xb2b   :  { %v873_v40 = vpack.c.bf16 %v2330_v39, %v2328_v38 }
 0xb2d   :  { %1701 = vmatmul.msk.bf16.vlgmr.msrb.gmra.mxu3 %vm169_vm3, %v873_v40 }
 0xbb0   :  { %v904_v41 = vpop.f32.mrf.mxu3 }
 0xbb1   :  { %v905_v42 = vadd.f32 %v1863_v35, %v904_v41  ;;  %v1806_v41 = vld [vmem:[%s2481_s5 + $0x18] sm:$0xff] }
 0xbb3   :  { %1039 = vrot.lane.b32.xlu0 %v905_v42, %s2025_s21  ;;  %910 = vrot.lane.b32.xlu1 %v905_v42, %s2024_s20 }
 0xbb8   :  { %v906_v43 = vpop.f32.mrf.mxu3 }
 0xbb9   :  { %v907_v18 = vadd.f32 %v1863_v35, %v906_v43 }
 0xbbb   :  { %937 = vrot.lane.b32.xlu2 %v907_v18, %s2024_s20  ;;  %1067 = vrot.lane.b32.xlu1 %v907_v18, %s2025_s21  ;;  %v1838_v8 = vpack.i.bf16 %v907_v18, %v905_v42 }
 0xbc3   :  { %1037 = vrot.lane.b32.xlu2 %v905_v42, %s2026_s22  ;;  %1065 = vrot.lane.b32.xlu1 %v907_v18, %s2026_s22 }
 0xc15   :  { %v938_v5 = vpop.permute.xlu2 %937 }
 0xc16   :  { %1704 = vmatpush.xpose.msk.msrb.mxu1 %vm283_vm11, %v938_v5 }
 0xc19   :  { %1705 = vmatmul.msk.f32.vlgmr.msrb.gmra.mxu1 %vm283_vm11, %v907_v18 }
 0xc1d   :  { %v1038_v46 = vpop.permute.xlu2 %1037 }
 0xc25   :  { %v1040_v44 = vpop.permute.xlu0 %1039  ;;  %v911_v45 = vpop.permute.xlu1 %910 }
 0xc26   :  { %1702 = vmatpush.xpose.msk.msrb.mxu0 %vm283_vm11, %v911_v45  ;;  %1708 = vmatpush.xpose.msk.msra.mxu2 %vm283_vm11, %v1040_v44  ;;  %v1805_v45 = vld [vmem:[%s2481_s5 + $0x10] sm:$0xff]  ;;  %s1573_s5 = sshll.u32 %s2029_s0, 4  ;;  %s1574_s5 = int_to_ptr.vmem [resolvable:$true] %s1573_s5 }
 0xc29   :  { %1703 = vmatmul.msk.f32.vlgmr.msrb.gmra.mxu0 %vm283_vm11, %v905_v42  ;;  %1709 = vmatmul.msk.f32.vlgmr.msra.gmra.mxu2 %vm283_vm11, %v1038_v46 }
 0xc2a   :  { %1205 = vmatpush.bf16.msrb.mxu2 %v1806_v41  ;;  %v1867_v41 = vld [vmem:[%s2484_s8 + $0x9] ss:$0 sm:$0xff] }
 0xc2d   :  { %v1068_v6 = vpop.permute.xlu1 %1067 }
 0xc2e   :  { %1710 = vmatpush.xpose.msk.msra.mxu3 %vm283_vm11, %v1068_v6  ;;  %1206 = vmatpush.bf16.msrb.mxu2 %v1805_v45 }
 0xc35   :  { %v1066_v47 = vpop.permute.xlu1 %1065 }
 0xc36   :  { %1711 = vmatmul.msk.f32.vlgmr.msra.gmra.mxu3 %vm283_vm11, %v1066_v47 }
 0xc96   :  { %v960_v29 = vpop.f32.mrf.mxu1 }
 0xc97   :  { %v961_v48 = vadd.f32 %v960_v29, %v2199_v25 }
 0xc99   :  { %v966_v49 = vsel %vm335_vm12, %v961_v48, -inf }
 0xc9a   :  { %967 = vmax.xlane.f32.xlu0 %v966_v49 }
 0xca6   :  { %v933_v50 = vpop.f32.mrf.mxu0 }
 0xca7   :  { %v934_v51 = vadd.f32 %v933_v50, %v2195_v20  ;;  %v1864_v50 = vld [vmem:[%s2484_s8 + $0xa] ss:$0 sm:$0xff] }
 0xca9   :  { %v963_v17 = vsel %vm335_vm12, %v934_v51, -inf }
 0xcaa   :  { %964 = vmax.xlane.f32.xlu2 %v963_v17 }
 0xcac   :  { %v1062_v26 = vpop.f32.mrf.mxu2 }
 0xcad   :  { %v1063_v52 = vadd.f32 %v1062_v26, %v2195_v20 }
 0xcaf   :  { %v1093_v53 = vsel %vm335_vm12, %v1063_v52, -inf }
 0xcb0   :  { %1094 = vmax.xlane.f32.xlu1 %v1093_v53 }
 0xcb9   :  { %v1090_v54 = vpop.f32.mrf.mxu3 }
 0xcba   :  { %v1091_v55 = vadd.f32 %v1090_v54, %v2199_v25 }
 0xcbc   :  { %v1096_v56 = vsel %vm335_vm12, %v1091_v55, -inf }
 0xcbd   :  { %1097 = vmax.xlane.f32.xlu2 %v1096_v56 }
 0xd0d   :  { %v968_v57 = vpop.xlane.xlu0 %967 }
 0xd0e   :  { %v970_v58 = vsub.f32 %v961_v48, %v968_v57 }
 0xd10   :  { %v973_v59 = vmul.f32 1.442695, %v970_v58 }
 0xd12   :  { %1907 = vpow2.f32 %v973_v59 }
 0xd18   :  { %v1908_v14 = vpop.eup %1907 }
 0xd19   :  { %v978_v60 = vsel %vm335_vm12, %v1908_v14, 0.0 }
 0xd1a   :  { %979 = vadd.xlane.f32.xlu1 %v978_v60 }
 0xd1d   :  { %v965_v61 = vpop.xlane.xlu2 %964 }
 0xd1e   :  { %v969_v62 = vsub.f32 %v934_v51, %v965_v61 }
 0xd20   :  { %v971_v20 = vmul.f32 1.442695, %v969_v62 }
 0xd22   :  { %1909 = vpow2.f32 %v971_v20 }
 0xd23   :  { %v1095_v15 = vpop.xlane.xlu1 %1094 }
 0xd24   :  { %v1099_v63 = vsub.f32 %v1063_v52, %v1095_v15 }
 0xd26   :  { %v1101_v0 = vmul.f32 1.442695, %v1099_v63 }
 0xd28   :  { %v1910_v1 = vpop.eup %1909  ;;  %1911 = vpow2.f32 %v1101_v0 }
 0xd29   :  { %v975_v25 = vsel %vm335_vm12, %v1910_v1, 0.0 }
 0xd2a   :  { %976 = vadd.xlane.f32.xlu0 %v975_v25  ;;  %v1807_v25 = vld [vmem:[%s2482_s6 + $0x10] sm:$0xff] }
 0xd2e   :  { %v1912_v2 = vpop.eup %1911 }
 0xd2f   :  { %v1105_v3 = vsel %vm335_vm12, %v1912_v2, 0.0 }
 0xd30   :  { %v1098_v4 = vpop.xlane.xlu2 %1097  ;;  %1106 = vadd.xlane.f32.xlu2 %v1105_v3 }
 0xd31   :  { %v1100_v7 = vsub.f32 %v1091_v55, %v1098_v4 }
 0xd33   :  { %v1103_v9 = vmul.f32 1.442695, %v1100_v7  ;;  %1839 = vrot.lane.b32.xlu1 %v1838_v8, %s2018_s25 }
 0xd35   :  { %1913 = vpow2.f32 %v1103_v9 }
 0xd3b   :  { %v1914_v11 = vpop.eup %1913 }
 0xd3c   :  { %v1108_v13 = vsel %vm335_vm12, %v1914_v11, 0.0 }
 0xd3d   :  { %1109 = vadd.xlane.f32.xlu0 %v1108_v13 }
 0xd48   :  { %1844 = vrot.lane.b32.xlu2 %v1838_v8, %s2027_s1 }
 0xd8d   :  { %v980_v16 = vpop.xlane.xlu1 %979 }
 0xd8e   :  { %1915 = vrcp.f32 %v980_v16 }
 0xd94   :  { %v1916_v12 = vpop.eup %1915 }
 0xd95   :  { %v984_v28 = vmul.f32 %v1916_v12, %v1908_v14 }
 0xd9d   :  { %v977_v10 = vpop.xlane.xlu0 %976 }
 0xd9e   :  { %1917 = vrcp.f32 %v977_v10 }
 0xda3   :  { %v1107_v19 = vpop.xlane.xlu2 %1106 }
 0xda4   :  { %v1918_v22 = vpop.eup %1917  ;;  %1919 = vrcp.f32 %v1107_v19 }
 0xda5   :  { %v1840_v23 = vpop.permute.xlu1 %1839  ;;  %v983_v31 = vmul.f32 %v1918_v22, %v1910_v1 }
 0xda6   :  { %v1842_v24 = vunpack.i.h.bf16 %v1840_v23  ;;  %v1841_v27 = vunpack.i.l.bf16 %v1840_v23 }
 0xda8   :  { %1006 = vmatpush.msra.mxu0 %v1841_v27  ;;  %1032 = vmatpush.msra.mxu1 %v1842_v24  ;;  %v1865_v27 = vld [vmem:[%s2484_s8 + $0xb] ss:$0 sm:$0xff] }
 0xda9   :  { %1706 = vmatmul.msk.f32.vlgmr.msra.gmra.mxu0 %vm335_vm12, %v983_v31  ;;  %1707 = vmatmul.msk.f32.vlgmr.msra.gmra.mxu1 %vm335_vm12, %v984_v28 }
 0xdaa   :  { %v1920_v32 = vpop.eup %1919 }
 0xdab   :  { %v1845_v21 = vpop.permute.xlu2 %1844  ;;  %v1113_v36 = vmul.f32 %v1920_v32, %v1912_v2  ;;  %v1866_v32 = vld [vmem:[%s2484_s8 + $0xc] ss:$0 sm:$0xff] }
 0xdac   :  { %v1847_v33 = vunpack.i.h.bf16 %v1845_v21  ;;  %v1846_v34 = vunpack.i.l.bf16 %v1845_v21 }
 0xdae   :  { %1136 = vmatpush.msrb.mxu0 %v1846_v34  ;;  %1162 = vmatpush.msrb.mxu1 %v1847_v33 }
 0xdb0   :  { %v1110_v37 = vpop.xlane.xlu0 %1109 }
 0xdb1   :  { %1921 = vrcp.f32 %v1110_v37  ;;  %1712 = vmatmul.msk.f32.vlgmr.msrb.gmra.mxu0 %vm335_vm12, %v1113_v36 }
 0xdb7   :  { %v1922_v40 = vpop.eup %1921 }
 0xdb8   :  { %v1114_v35 = vmul.f32 %v1922_v40, %v1914_v11 }
 0xdba   :  { %1713 = vmatmul.msk.f32.vlgmr.msrb.gmra.mxu1 %vm335_vm12, %v1114_v35 }
 0xe26   :  { %v1008_v42 = vpop.f32.mrf.mxu0  ;;  %v1034_v43 = vpop.f32.mrf.mxu1 }
 0xe2e   :  { %v1138_v18 = vpop.f32.mrf.mxu0 }
 0xe37   :  { %v1164_v5 = vpop.f32.mrf.mxu1 }
 0xe38   :  { %v1848_v44 = vpack.i.bf16 %v1164_v5, %v1138_v18 }
 0xe3a   :  { %1849 = vrot.lane.b32.xlu0 %v1848_v44, %s2028_s27 }
 0xeac   :  { %v1850_v46 = vpop.permute.xlu0 %1849 }
 0xead   :  { %v1852_v6 = vunpack.i.h.bf16 %v1850_v46  ;;  %v1851_v47 = vunpack.i.l.bf16 %v1850_v46 }
 0xeaf   :  { %v1176_v29 = vsel %vm283_vm11, %v1034_v43, %v1852_v6  ;;  %v1175_v48 = vsel %vm283_vm11, %v1008_v42, %v1851_v47 }
 0xeb0   :  { %v1177_v49 = vpack.c.bf16 %v1176_v29, %v1175_v48 }
 0xeb2   :  { %1726 = vmatmul.msk.bf16.vlgmr.msrb.gmra.mxu2 %vm169_vm3, %v1177_v49 }
 0xf35   :  { %v1208_v51 = vpop.f32.mrf.mxu2 }
 0xf36   :  { %v1209_v17 = vadd.f32 %v1864_v50, %v1208_v51 }
 0xf38   :  { %v1213_v26 = vadd.f32 %v1209_v17, %v2328_v38 }
 0xf3a   :  { %v1215_v52 = vsel %vm169_vm3, %v1213_v26, 0.0 }
 0xf3b   :  { %1216 = vadd.xlane.f32.xlu1 %v1215_v52 }
 0xf3d   :  { %v1210_v53 = vpop.f32.mrf.mxu2 }
 0xf3e   :  { %v1211_v54 = vadd.f32 %v1864_v50, %v1210_v53 }
 0xf40   :  { %v1214_v55 = vadd.f32 %v1211_v54, %v2330_v39  ;;  %v1808_v39 = vld [vmem:[%s2482_s6 + $0x18] sm:$0xff]  ;;  %s2030_s6 = smov 128  }
 0xf41   :  { %1293 = vmatpush.bf16.msrb.mxu3 %v1808_v39  ;;  %v1812_v54 = vld [vmem:[%s2483_s7 + $0x38] sm:$0xff] }
 0xf42   :  { %v1218_v56 = vsel %vm169_vm3, %v1214_v55, 0.0  ;;  %1431 = vmatpush.bf16.msra.mxu0 %v1812_v54 }
 0xf43   :  { %1219 = vadd.xlane.f32.xlu0 %v1218_v56 }
 0xf45   :  { %1294 = vmatpush.bf16.msrb.mxu3 %v1807_v25 }
 0xfae   :  { %v1217_v57 = vpop.xlane.xlu1 %1216 }
 0xfaf   :  { %v1221_v58 = vmul.f32 %v1217_v57, %v2140_v30 }
 0xfb1   :  { %v1223_v59 = vsub.f32 %v1213_v26, %v1221_v58 }
 0xfb3   :  { %v1225_v14 = vmul.f32 %v1223_v59, %v1223_v59 }
 0xfb5   :  { %v1227_v60 = vsel %vm169_vm3, %v1225_v14, 0.0 }
 0xfb6   :  { %v1220_v61 = vpop.xlane.xlu0 %1219  ;;  %1228 = vadd.xlane.f32.xlu2 %v1227_v60 }
 0xfb7   :  { %v1222_v38 = vmul.f32 %v1220_v61, %v2140_v30  ;;  %v1811_v61 = vld [vmem:[%s2483_s7 + $0x30] sm:$0xff] }
 0xfb8   :  { %1432 = vmatpush.bf16.msra.mxu0 %v1811_v61 }
 0xfb9   :  { %v1224_v62 = vsub.f32 %v1214_v55, %v1222_v38 }
 0xfbb   :  { %v1226_v20 = vmul.f32 %v1224_v62, %v1224_v62 }
 0xfbd   :  { %v1230_v15 = vsel %vm169_vm3, %v1226_v20, 0.0 }
 0xfbe   :  { %1231 = vadd.xlane.f32.xlu1 %v1230_v15 }
0x1029   :  { %v1229_v63 = vpop.xlane.xlu2 %1228 }
0x102a   :  { %v1233_v0 = vmul.f32 %v1229_v63, %v2140_v30 }
0x102c   :  { %v1235_v1 = vadd.f32 1e-12, %v1233_v0 }
0x102e   :  { %1923 = vrsqrt.f32 %v1235_v1  ;;  %vm1243_vm12 = vweird.f32 %v1235_v1 }
0x1031   :  { %v1232_v2 = vpop.xlane.xlu1 %1231 }
0x1032   :  { %v1234_v3 = vmul.f32 %v1232_v2, %v2140_v30 }
0x1034   :  { %v1924_v4 = vpop.eup %1923  ;;  %v1236_v7 = vadd.f32 1e-12, %v1234_v3 }
0x1035   :  { %v1238_v8 = vmul.f32 %v1924_v4, %v1235_v1  ;;  %vm1244_vm11 = vweird.f32 %v1924_v4  ;;  %v1810_v1 = vld [vmem:[%s2483_s7 + $0x28] sm:$0xff] }
0x1036   :  { %1925 = vrsqrt.f32 %v1236_v7  ;;  %vm1245_vm6 = vmor %vm1243_vm12, %vm1244_vm11  ;;  %vm1253_vm8 = vweird.f32 %v1236_v7  ;;  %1433 = vmatpush.bf16.msra.mxu0 %v1810_v1 }
0x1037   :  { %v1239_v9 = vmul.f32 %v1924_v4, %v1238_v8  ;;  %v1809_v8 = vld [vmem:[%s2483_s7 + $0x20] sm:$0xff] }
0x1039   :  { %v1240_v11 = vmul.f32 0.5, %v1239_v9 }
0x103a   :  { %1434 = vmatpush.bf16.msra.mxu0 %v1809_v8 }
0x103b   :  { %v1241_v13 = vsub.f32 1.5, %v1240_v11 }
0x103c   :  { %v1926_v16 = vpop.eup %1925 }
0x103d   :  { %v1242_v10 = vmul.f32 %v1924_v4, %v1241_v13  ;;  %v1248_v12 = vmul.f32 %v1926_v16, %v1236_v7  ;;  %vm1254_vm7 = vweird.f32 %v1926_v16 }
0x103e   :  { %vm1255_vm9 = vmor %vm1253_vm8, %vm1254_vm7 }
0x103f   :  { %v1249_v19 = vmul.f32 %v1926_v16, %v1248_v12  ;;  %v1246_v22 = vsel %vm1245_vm6, %v1924_v4, %v1242_v10 }
0x1040   :  { %v1257_v28 = vmul.f32 %v1246_v22, %v1223_v59 }
0x1041   :  { %v1250_v23 = vmul.f32 0.5, %v1249_v19 }
0x1042   :  { %v1260_v33 = vmul.f32 %v1865_v27, %v1257_v28 }
0x1043   :  { %v1251_v24 = vsub.f32 1.5, %v1250_v23 }
0x1044   :  { %v2405_v37 = vadd.f32 %v1866_v32, %v1260_v33 }
0x1045   :  { %v1252_v31 = vmul.f32 %v1926_v16, %v1251_v24 }
0x1047   :  { %v1256_v21 = vsel %vm1255_vm9, %v1926_v16, %v1252_v31 }
0x1048   :  { %v1258_v34 = vmul.f32 %v1256_v21, %v1224_v62 }
0x104a   :  { %v1261_v36 = vmul.f32 %v1865_v27, %v1258_v34 }
0x104c   :  { %v2407_v40 = vadd.f32 %v1866_v32, %v1261_v36 }
0x104e   :  { %v1265_v35 = vpack.c.bf16 %v2407_v40, %v2405_v37 }
0x1050   :  { %1739 = vmatmul.msk.bf16.vlgmr.msrb.gmra.mxu3 %vm169_vm3, %v1265_v35 }
0x10d3   :  { %v1296_v42 = vpop.f32.mrf.mxu3 }
0x10d4   :  { %v2415_v43 = vadd.f32 %v1867_v41, %v1296_v42 }
0x10d6   :  { %v2418_v18 = vmul.f32 0.70710677, %v2415_v43 }
0x10d8   :  { %v1305_v5 = vmul.f32 %v2418_v18, %v2418_v18 }
0x10da   :  { %v1306_v44 = vmin.f32 %v1305_v5, 16.0 }
0x10db   :  { %v1298_v45 = vpop.f32.mrf.mxu3 }
0x10dc   :  { %v1307_v46 = vmul.f32 2.1237322e-06, %v1306_v44  ;;  %v1318_v6 = vmul.f32 3.8918573e-05, %v1306_v44  ;;  %v2422_v47 = vadd.f32 %v1867_v41, %v1298_v45 }
0x10de   :  { %v1308_v29 = vadd.f32 0.00028619796, %v1307_v46  ;;  %v1319_v48 = vadd.f32 0.001143296, %v1318_v6  ;;  %v2425_v49 = vmul.f32 0.70710677, %v2422_v47 }
0x10e0   :  { %v1320_v50 = vmul.f32 %v1319_v48, %v1306_v44  ;;  %v1345_v51 = vmul.f32 %v2425_v49, %v2425_v49  ;;  %v1309_v17 = vmul.f32 %v1308_v29, %v1306_v44 }
0x10e2   :  { %v1321_v26 = vadd.f32 0.014752088, %v1320_v50  ;;  %v1346_v52 = vmin.f32 %v1345_v51, 16.0  ;;  %v1310_v57 = vadd.f32 0.0036580483, %v1309_v17 }
0x10e4   :  { %v1322_v53 = vmul.f32 %v1321_v26, %v1306_v44  ;;  %v1347_v55 = vmul.f32 2.1237322e-06, %v1346_v52  ;;  %v1358_v56 = vmul.f32 3.8918573e-05, %v1346_v52  ;;  %v1311_v20 = vmul.f32 %v1310_v57, %v1306_v44 }
0x10e6   :  { %v1323_v58 = vadd.f32 0.112945676, %v1322_v53  ;;  %v1348_v59 = vadd.f32 0.00028619796, %v1347_v55  ;;  %v1359_v14 = vadd.f32 0.001143296, %v1358_v56 }
0x10e7   :  { %v1312_v2 = vadd.f32 0.05243302, %v1311_v20 }
0x10e8   :  { %v1324_v60 = vmul.f32 %v1323_v58, %v1306_v44  ;;  %v1349_v38 = vmul.f32 %v1348_v59, %v1346_v52  ;;  %v1360_v62 = vmul.f32 %v1359_v14, %v1346_v52  ;;  %v1301_v59 = vmul.f32 0.5, %v2415_v43 }
0x10e9   :  { %v1313_v11 = vmul.f32 %v1312_v2, %v1306_v44  ;;  %v1302_v14 = vmul.f32 0.5, %v2422_v47 }
0x10ea   :  { %v1325_v15 = vadd.f32 0.4994258, %v1324_v60  ;;  %v1350_v39 = vadd.f32 0.0036580483, %v1349_v38  ;;  %v1361_v63 = vadd.f32 0.014752088, %v1360_v62 }
0x10eb   :  { %v1314_v19 = vadd.f32 0.18741608, %v1313_v11 }
0x10ec   :  { %v1326_v0 = vmul.f32 %v1325_v15, %v1306_v44  ;;  %v1362_v25 = vmul.f32 %v1361_v63, %v1346_v52  ;;  %v1351_v4 = vmul.f32 %v1350_v39, %v1346_v52 }
0x10ed   :  { %v1315_v28 = vmul.f32 %v1314_v19, %v1306_v44  ;;  %v1813_v19 = vld [vmem:[#allocation2] sm:$0xff] }
0x10ee   :  { %v1327_v3 = vadd.f32 1.0, %v1326_v0  ;;  %v1363_v7 = vadd.f32 0.112945676, %v1362_v25  ;;  %v1352_v13 = vadd.f32 0.05243302, %v1351_v4 }
0x10ef   :  { %v1316_v36 = vadd.f32 1.1283791, %v1315_v28 }
0x10f0   :  { %1927 = vrcp.f32 %v1327_v3  ;;  %v1364_v9 = vmul.f32 %v1363_v7, %v1346_v52  ;;  %v1353_v23 = vmul.f32 %v1352_v13, %v1346_v52  ;;  %v1339_v21 = vand.u32 2147483648, %v1327_v3 }
0x10f1   :  { %v1337_v33 = vand.u32 2147483647, %v1327_v3  ;;  %vm1333_vm13 = vweird.f32 %v1327_v3  ;;  %v1317_v6 = vmul.f32 %v1316_v36, %v2418_v18 }
0x10f2   :  { %v1365_v16 = vadd.f32 0.4994258, %v1364_v9  ;;  %v1354_v32 = vadd.f32 0.18741608, %v1353_v23  ;;  %v1340_v42 = vor.u32 1.1754944e-38, %v1339_v21 }
0x10f3   :  { %vm1338_vm0 = vcmp.eq.f32.partialorder %v1337_v33, 8.507059e+37 }
0x10f4   :  { %v1366_v10 = vmul.f32 %v1365_v16, %v1346_v52  ;;  %v1355_v5 = vmul.f32 %v1354_v32, %v1346_v52 }
0x10f6   :  { %v1928_v12 = vpop.eup %1927  ;;  %v1367_v24 = vadd.f32 1.0, %v1366_v10  ;;  %v1356_v44 = vadd.f32 1.1283791, %v1355_v5 }
0x10f7   :  { %v1329_v22 = vmul.f32 %v1928_v12, %v1327_v3  ;;  %vm1334_vm10 = vweird.f32 %v1928_v12 }
0x10f8   :  { %1929 = vrcp.f32 %v1367_v24  ;;  %vm1335_vm15 = vmor %vm1333_vm13, %vm1334_vm10  ;;  %v1379_v48 = vand.u32 2147483648, %v1367_v24  ;;  %v1377_v17 = vand.u32 2147483647, %v1367_v24  ;;  %vm1373_vm2 = vweird.f32 %v1367_v24 }
0x10f9   :  { %v1330_v27 = vsub.f32 1.0, %v1329_v22  ;;  %v1357_v55 = vmul.f32 %v1356_v44, %v2425_v49  ;;  %v1868_v49 = vld [vmem:[%s2484_s8 + $0xd] ss:$0 sm:$0xff] }
0x10fa   :  { %v1380_v53 = vor.u32 1.1754944e-38, %v1379_v48  ;;  %vm1378_vm5 = vcmp.eq.f32.partialorder %v1377_v17, 8.507059e+37 }
0x10fb   :  { %v1331_v31 = vmul.f32 %v1928_v12, %v1330_v27 }
0x10fd   :  { %v1332_v34 = vadd.f32 %v1928_v12, %v1331_v31 }
0x10fe   :  { %v1930_v35 = vpop.eup %1929 }
0x10ff   :  { %v1336_v41 = vsel %vm1335_vm15, %v1928_v12, %v1332_v34  ;;  %v1369_v45 = vmul.f32 %v1930_v35, %v1367_v24  ;;  %vm1374_vm1 = vweird.f32 %v1930_v35 }
0x1100   :  { %v1341_v46 = vsel %vm1338_vm0, %v1340_v42, %v1336_v41  ;;  %vm1375_vm4 = vmor %vm1373_vm2, %vm1374_vm1 }
0x1101   :  { %v1370_v29 = vsub.f32 1.0, %v1369_v45  ;;  %v1342_v50 = vmul.f32 %v1341_v46, %v1317_v6 }
0x1103   :  { %v1371_v51 = vmul.f32 %v1930_v35, %v1370_v29  ;;  %v1740_v54 = vclamps-f32 %v1342_v50, 1.0  ;;  %v1870_v29 = vld [vmem:[%s2484_s8 + $0xf] ss:$0 sm:$0xff] }
0x1105   :  { %v1372_v26 = vadd.f32 %v1930_v35, %v1371_v51  ;;  %v1385_v58 = vadd.f32 1.0, %v1740_v54  ;;  %v1815_v54 = vld [vmem:[#allocation5] sm:$0xff] }
0x1107   :  { %v1376_v52 = vsel %vm1375_vm4, %v1930_v35, %v1372_v26  ;;  %v1387_v61 = vmul.f32 %v1385_v58, %v1301_v59 }
0x1108   :  { %v1381_v56 = vsel %vm1378_vm5, %v1380_v53, %v1376_v52  ;;  %v1816_v53 = vld [vmem:[#allocation5 + $0x8] sm:$0xff]  ;;  %v1871_v52 = vld [vmem:[%s2479_s3 + $0x12] ss:$0 sm:$0xff] }
0x1109   :  { %v1382_v57 = vmul.f32 %v1381_v56, %v1357_v55  ;;  %1559 = vmatpush.bf16.msra.mxu2 %v1816_v53 }
0x110b   :  { %v1741_v18 = vclamps-f32 %v1382_v57, 1.0 }
0x110d   :  { %v1386_v60 = vadd.f32 1.0, %v1741_v18  ;;  %1560 = vmatpush.bf16.msra.mxu2 %v1815_v54 }
0x110f   :  { %v1388_v38 = vmul.f32 %v1386_v60, %v1302_v14  ;;  %v1872_v60 = vld [vmem:[%s2479_s3 + $0x13] ss:$0 sm:$0xff] }
0x1111   :  { %v1389_v62 = vpack.c.bf16 %v1388_v38, %v1387_v61 }
0x1113   :  { %1766 = vmatmul.msk.bf16.vlgmr.msra.gmra.mxu0 %vm794_vm14, %v1389_v62 }
0x1190   :  { %v1436_v20 = vpop.f32.mrf.mxu0 }
0x1191   :  { %v1437_v15 = vadd.f32 %v1868_v49, %v1436_v20 }
0x1193   :  { %v1441_v39 = vadd.f32 %v1437_v15, %v2405_v37 }
0x1195   :  { %v1443_v63 = vsel %vm169_vm3, %v1441_v39, 0.0 }
0x1196   :  { %1444 = vadd.xlane.f32.xlu2 %v1443_v63 }
0x1198   :  { %v1438_v43 = vpop.f32.mrf.mxu0 }
0x1199   :  { %v1439_v0 = vadd.f32 %v1868_v49, %v1438_v43 }
0x119b   :  { %v1442_v47 = vadd.f32 %v1439_v0, %v2407_v40  ;;  %v1814_v40 = vld [vmem:[#allocation2 + $0x8] sm:$0xff] }
0x119c   :  { %1521 = vmatpush.bf16.msra.mxu1 %v1814_v40 }
0x119d   :  { %v1446_v1 = vsel %vm169_vm3, %v1442_v47, 0.0 }
0x119e   :  { %1447 = vadd.xlane.f32.xlu0 %v1446_v1 }
0x11a0   :  { %1522 = vmatpush.bf16.msra.mxu1 %v1813_v19 }
0x1209   :  { %v1445_v25 = vpop.xlane.xlu2 %1444 }
0x120a   :  { %v1449_v2 = vmul.f32 %v1445_v25, %v2140_v30 }
0x120c   :  { %v1451_v3 = vsub.f32 %v1441_v39, %v1449_v2 }
0x120e   :  { %v1453_v4 = vmul.f32 %v1451_v3, %v1451_v3 }
0x1210   :  { %v1455_v7 = vsel %vm169_vm3, %v1453_v4, 0.0 }
0x1211   :  { %v1448_v8 = vpop.xlane.xlu0 %1447  ;;  %1456 = vadd.xlane.f32.xlu1 %v1455_v7 }
0x1212   :  { %v1450_v37 = vmul.f32 %v1448_v8, %v2140_v30 }
0x1214   :  { %v1452_v9 = vsub.f32 %v1442_v47, %v1450_v37 }
0x1216   :  { %v1454_v11 = vmul.f32 %v1452_v9, %v1452_v9 }
0x1218   :  { %v1458_v13 = vsel %vm169_vm3, %v1454_v11, 0.0 }
0x1219   :  { %1459 = vadd.xlane.f32.xlu2 %v1458_v13 }
0x1284   :  { %v1457_v16 = vpop.xlane.xlu1 %1456 }
0x1285   :  { %v1461_v10 = vmul.f32 %v1457_v16, %v2140_v30 }
0x1287   :  { %v1463_v12 = vadd.f32 1e-12, %v1461_v10 }
0x1289   :  { %1931 = vrsqrt.f32 %v1463_v12  ;;  %vm1471_vm11 = vweird.f32 %v1463_v12 }
0x128c   :  { %v1460_v22 = vpop.xlane.xlu2 %1459 }
0x128d   :  { %v1462_v23 = vmul.f32 %v1460_v22, %v2140_v30  ;;  %v1869_v30 = vld [vmem:[%s2484_s8 + $0xe] ss:$0 sm:$0xff] }
0x128f   :  { %v1932_v24 = vpop.eup %1931  ;;  %v1464_v27 = vadd.f32 1e-12, %v1462_v23 }
0x1290   :  { %v1466_v28 = vmul.f32 %v1932_v24, %v1463_v12  ;;  %vm1472_vm14 = vweird.f32 %v1932_v24 }
0x1291   :  { %1933 = vrsqrt.f32 %v1464_v27  ;;  %vm1473_vm12 = vmor %vm1471_vm11, %vm1472_vm14  ;;  %vm1481_vm7 = vweird.f32 %v1464_v27 }
0x1292   :  { %v1467_v31 = vmul.f32 %v1932_v24, %v1466_v28 }
0x1294   :  { %v1468_v21 = vmul.f32 0.5, %v1467_v31 }
0x1296   :  { %v1469_v32 = vsub.f32 1.5, %v1468_v21 }
0x1297   :  { %v1934_v33 = vpop.eup %1933 }
0x1298   :  { %v1470_v34 = vmul.f32 %v1932_v24, %v1469_v32  ;;  %v1476_v36 = vmul.f32 %v1934_v33, %v1464_v27  ;;  %vm1482_vm6 = vweird.f32 %v1934_v33 }
0x1299   :  { %vm1483_vm8 = vmor %vm1481_vm7, %vm1482_vm6 }
0x129a   :  { %v1477_v35 = vmul.f32 %v1934_v33, %v1476_v36  ;;  %v1474_v41 = vsel %vm1473_vm12, %v1932_v24, %v1470_v34 }
0x129b   :  { %v1485_v45 = vmul.f32 %v1474_v41, %v1451_v3 }
0x129c   :  { %v1478_v42 = vmul.f32 0.5, %v1477_v35 }
0x129d   :  { %v1488_v44 = vmul.f32 %v1869_v30, %v1485_v45 }
0x129e   :  { %v1479_v5 = vsub.f32 1.5, %v1478_v42 }
0x129f   :  { %v1491_v51 = vadd.f32 %v1870_v29, %v1488_v44 }
0x12a0   :  { %v1480_v46 = vmul.f32 %v1934_v33, %v1479_v5 }
0x12a2   :  { %v1484_v6 = vsel %vm1483_vm8, %v1934_v33, %v1480_v46 }
0x12a3   :  { %v1486_v48 = vmul.f32 %v1484_v6, %v1452_v9 }
0x12a5   :  { %v1489_v50 = vmul.f32 %v1869_v30, %v1486_v48 }
0x12a7   :  { %v1492_v17 = vadd.f32 %v1870_v29, %v1489_v50 }
0x12a9   :  { %v1493_v26 = vpack.c.bf16 %v1492_v17, %v1491_v51 }
0x12ab   :  { %1775 = vmatmul.msk.bf16.vlgmr.msra.gmra.mxu1 %vm169_vm3, %v1493_v26 }
0x1328   :  { %v1524_v55 = vpop.f32.mrf.mxu1 }
0x1329   :  { %v1525_v56 = vadd.f32 %v1871_v52, %v1524_v55 }
0x132b   :  { %1935 = vtanh.f32 %v1525_v56 }
0x1330   :  { %v1526_v57 = vpop.f32.mrf.mxu1 }
0x1331   :  { %v1527_v58 = vadd.f32 %v1871_v52, %v1526_v57  ;;  %v1936_v18 = vpop.eup %1935 }
0x1333   :  { %1937 = vtanh.f32 %v1527_v58 }
0x1339   :  { %v1938_v59 = vpop.eup %1937 }
0x133a   :  { %v1531_v14 = vpack.c.bf16 %v1938_v59, %v1936_v18 }
0x133c   :  { %1784 = vmatmul.msk.bf16.vlgmr.msra.gmra.mxu2 %vm169_vm3, %v1531_v14 }
0x13bf   :  { %v1562_v61 = vpop.f32.mrf.mxu2 }
0x13c0   :  { %v1563_v38 = vadd.f32 %v1872_v60, %v1562_v61 }
0x13c2   :  { %1567 = vst [vmem:[#allocation7] sm:$0xff] %v1563_v38 }
0x13c7   :  { %v1564_v62 = vpop.f32.mrf.mxu2 }
0x13c8   :  { %v1565_v49 = vadd.f32 %v1872_v60, %v1564_v62 }
0x13ca   :  { %1568 = vst [vmem:[#allocation7 + $0x8] sm:$0xff] %v1565_v49 }
0x13cb   :  { %1581 = dma.vmem_to_hbm [thread:$0]  %s1574_s5, 256, %s1576_s26, [#allocation4], %s2030_s6, %s2030_s6, %s2031_s28  }
0x13cc   :  { %2015 = dma.done.wait [#allocation4], 256  }
0x13cd   :  { %2016 = vsyncadd [#allocation4], 4294967040 }
0x13ce   :  { %1586 = vsyncpa [#allocation3], 1 }
0x13cf   :  { %1587 = vsyncpa [#allocation6], 1 }
0x13d0   :  { %1588 = vsyncpa [#allocation4], 1 }

</bundles_post_ra>
